<compile_context>
chip_gen: v7x
topology: tpu7x:2x2x1
jax: 0.10.0
libtpu: 0.0.40
codegen_flags: <defaults>
</compile_context>

<pallas_src>
import functools

import jax
import jax.numpy as jnp
import numpy as np
from jax.experimental import pallas as pl
from jax.experimental.pallas import tpu as pltpu

NEG_FILL = -1e30          # finite mask fill (more robust than float32 min)
NEG_MIN = float(np.finfo(np.float32).min)   # used only by the PyTorch-faithful reference
LN_EPS = 1e-5


# ---------------------------------------------------------------------------
# Fused kernel: Bb batch elements per grid step
# ---------------------------------------------------------------------------

def _layernorm(y, gamma, beta):
    mu = jnp.mean(y, axis=-1, keepdims=True)
    var = jnp.mean((y - mu) ** 2, axis=-1, keepdims=True)
    return (y - mu) * jax.lax.rsqrt(var + LN_EPS) * gamma + beta


def _decoder_block_kernel(x_ref, enc_ref, pad_ref,
                          wqkv1_ref, bqkv1_ref, wo1_ref, bo1_ref, g1_ref, be1_ref,
                          wq2_ref, bq2_ref, wkv2_ref, bkv2_ref, wo2_ref, bo2_ref,
                          g2_ref, be2_ref,
                          w1_ref, b1_ref, w2_ref, b2_ref,
                          o_ref, *, n_heads):
    """Whole DecoderBlock forward for a block of Bb batch elements.

    x_ref  : (Bb, S, E)   decoder input (also the first residual branch)
    enc_ref: (Bb, Sk, E)  encoder output (keys/values of cross-attention)
    pad_ref: (Bb, Sk)     1.0 = valid key, 0.0 = padded key (decoder pad mask,
                          applied to the keys of BOTH attentions, as in the module)
    All weights arrive pre-fused / pre-scaled / bf16 (see fuse_decoder_params).
    """
    Bb, S, E = x_ref.shape
    Sk = enc_ref.shape[1]
    hd = E // n_heads

    x = x_ref[...]                                    # (Bb, S, E) f32
    xf = x.reshape(Bb * S, E)                         # token rows for the projections
    encf = enc_ref[...].reshape(Bb * Sk, E)

    # Masks (in-kernel, no HBM tri-mask input; shared across heads).
    pad_keep = pad_ref[...] > 0.5                                     # (Bb, Sk)
    row = jax.lax.broadcasted_iota(jnp.int32, (S, S), 0)
    col = jax.lax.broadcasted_iota(jnp.int32, (S, S), 1)
    keep_self = jnp.logical_and(row >= col, pad_keep[:, None, :])     # (Bb, S, S)
    keep_cross = pad_keep[:, None, :]                                 # (Bb, 1, Sk)

    def mha(q, k, v, keep, wo_h, bo, skv):
        """Multi-head attention.

        q       : (Bb*S,  E) f32, scale already folded into Wq
        k, v    : (Bb*skv, E) f32
        wo_h    : (H, hd, E) bf16 -- per-head output projection (replaces head concat)
        """
        q3 = q.reshape(Bb, S, E).astype(jnp.bfloat16)
        k3 = k.reshape(Bb, skv, E).astype(jnp.bfloat16)
        v3 = v.reshape(Bb, skv, E).astype(jnp.bfloat16)
        out = jnp.zeros((Bb * S, E), jnp.float32)
        for h in range(n_heads):                       # unrolled; no stack/concat
            sl = slice(h * hd, (h + 1) * hd)
            s = jnp.einsum("bqd,bkd->bqk", q3[:, :, sl], k3[:, :, sl],
                           preferred_element_type=jnp.float32)        # (Bb, S, skv)
            s = jnp.where(keep, s, NEG_FILL)
            s = s - jnp.max(s, axis=-1, keepdims=True)
            p = jnp.exp(s)
            p = p * pl.reciprocal(jnp.sum(p, axis=-1, keepdims=True), approx=True)
            a = jnp.einsum("bqk,bkd->bqd", p.astype(jnp.bfloat16), v3[:, :, sl],
                           preferred_element_type=jnp.float32)        # (Bb, S, hd)
            out = out + jnp.dot(a.reshape(Bb * S, hd).astype(jnp.bfloat16), wo_h[h],
                                preferred_element_type=jnp.float32)
        return out + bo                                                # (Bb*S, E)

    # ---- self-attention + residual + LayerNorm ----
    qkv = jnp.dot(xf.astype(jnp.bfloat16), wqkv1_ref[...],
                  preferred_element_type=jnp.float32) + bqkv1_ref[...]   # (Bb*S, 3E)
    a1 = mha(qkv[:, :E], qkv[:, E:2 * E], qkv[:, 2 * E:],
             keep_self, wo1_ref[...], bo1_ref[...], S)
    h1 = _layernorm(a1 + xf, g1_ref[...], be1_ref[...])                 # (Bb*S, E) f32

    # ---- cross-attention + residual + LayerNorm ----
    q2 = jnp.dot(h1.astype(jnp.bfloat16), wq2_ref[...],
                 preferred_element_type=jnp.float32) + bq2_ref[...]
    kv2 = jnp.dot(encf.astype(jnp.bfloat16), wkv2_ref[...],
                  preferred_element_type=jnp.float32) + bkv2_ref[...]    # (Bb*Sk, 2E)
    a2 = mha(q2, kv2[:, :E], kv2[:, E:], keep_cross, wo2_ref[...], bo2_ref[...], Sk)
    h2 = _layernorm(a2 + h1, g2_ref[...], be2_ref[...])

    # ---- feed-forward + residual ----
    f = jnp.maximum(
        jnp.dot(h2.astype(jnp.bfloat16), w1_ref[...],
                preferred_element_type=jnp.float32) + b1_ref[...], 0.0)
    out = jnp.dot(f.astype(jnp.bfloat16), w2_ref[...],
                  preferred_element_type=jnp.float32) + b2_ref[...] + h2
    o_ref[...] = out.reshape(Bb, S, E).astype(o_ref.dtype)


# ---------------------------------------------------------------------------
# One-time parameter fusion (done at init, NOT per call)
# ---------------------------------------------------------------------------

def fuse_decoder_params(p, n_heads):
    """Fuse QKV / KV weights, fold the 1/sqrt(E) score scale into Wq/bq, pre-reshape
    Wo to (H, hd, E), and cast matmul weights to bf16 (biases / LN params stay f32)."""
    E = p["wq1"].shape[0]
    hd = E // n_heads
    scale = float(E) ** -0.5
    bf = jnp.bfloat16
    return {
        "wqkv1": jnp.concatenate([p["wq1"] * scale, p["wk1"], p["wv1"]], axis=1).astype(bf),
        "bqkv1": jnp.concatenate([p["bq1"] * scale, p["bk1"], p["bv1"]], axis=1),
        "wo1": p["wo1"].reshape(n_heads, hd, E).astype(bf), "bo1": p["bo1"],
        "g1": p["g1"], "be1": p["be1"],
        "wq2": (p["wq2"] * scale).astype(bf), "bq2": p["bq2"] * scale,
        "wkv2": jnp.concatenate([p["wk2"], p["wv2"]], axis=1).astype(bf),
        "bkv2": jnp.concatenate([p["bk2"], p["bv2"]], axis=1),
        "wo2": p["wo2"].reshape(n_heads, hd, E).astype(bf), "bo2": p["bo2"],
        "g2": p["g2"], "be2": p["be2"],
        "w1": p["w1"].astype(bf), "b1": p["b1"],
        "w2": p["w2"].astype(bf), "b2": p["b2"],
    }


# ---------------------------------------------------------------------------
# Wrapper (single pallas_call for the whole block)
# ---------------------------------------------------------------------------

def decoder_block_pallas(x, enc_out, pad_mask, fp, n_heads, block_b=None):
    B, S, E = x.shape
    Sk = enc_out.shape[1]
    assert S == Sk, "original module applies the decoder pad mask to both attentions' keys"
    assert E % n_heads == 0
    if block_b is None:
        block_b = B                      # whole batch per step at small B
    assert B % block_b == 0

    pad_f = pad_mask.astype(jnp.float32)                              # (B, Sk)
    kernel = functools.partial(_decoder_block_kernel, n_heads=n_heads)

    weights = [fp["wqkv1"], fp["bqkv1"], fp["wo1"], fp["bo1"], fp["g1"], fp["be1"],
               fp["wq2"], fp["bq2"], fp["wkv2"], fp["bkv2"], fp["wo2"], fp["bo2"],
               fp["g2"], fp["be2"], fp["w1"], fp["b1"], fp["w2"], fp["b2"]]

    def wspec(a):
        # Grid-invariant (resident) weight block.  At realistic E, add
        # pipeline_mode=pl.Buffered(1) here (double-buffering grid-invariant blocks
        # only doubles VMEM) and tile the FFN weights over the 4E hidden dim.
        return pl.BlockSpec(a.shape, lambda b, n=a.ndim: (0,) * n)

    # Advisory cost estimate so XLA schedules neighbors around this custom call.
    flops = int(2 * B * S * 14 * E * E + 4 * B * Sk * E * E + 4 * B * S * E * (S + Sk))
    transcendentals = int(B * n_heads * S * (S + Sk) + 2 * B * S)
    weight_bytes = sum(int(np.prod(a.shape)) * np.dtype(a.dtype).itemsize for a in weights)
    bytes_accessed = int(4 * B * S * E * 2 + 4 * B * Sk + weight_bytes + 4 * B * S * E)

    # Scoped-VMEM limit sized from the resident set (generous floor so tiny shapes
    # never under-provision; cap well below v7x's 64 MiB physical VMEM).
    act_bytes = 4 * block_b * S * E * 2 * 2            # x + out blocks, double-buffered
    vmem_limit = int(min(48 << 20, max(16 << 20, 4 * (weight_bytes + act_bytes))))

    return pl.pallas_call(
        kernel,
        out_shape=jax.ShapeDtypeStruct((B, S, E), jnp.float32),
        grid=(B // block_b,),
        in_specs=[pl.BlockSpec((block_b, S, E), lambda b: (b, 0, 0)),    # x
                  pl.BlockSpec((block_b, Sk, E), lambda b: (b, 0, 0)),   # enc_out
                  pl.BlockSpec((block_b, Sk), lambda b: (b, 0))]         # padding mask
                 + [wspec(a) for a in weights],
        out_specs=pl.BlockSpec((block_b, S, E), lambda b: (b, 0, 0)),
        compiler_params=pltpu.CompilerParams(
            dimension_semantics=("parallel",),
            vmem_limit_bytes=vmem_limit),
        cost_estimate=pl.CostEstimate(flops=flops, transcendentals=transcendentals,
                                      bytes_accessed=bytes_accessed),
    )(x, enc_out, pad_f, *weights)


# ---------------------------------------------------------------------------
# Pure-JAX reference (mirrors the PyTorch forward, f32, dropout = identity)
# ---------------------------------------------------------------------------

def _ref_attn(xq, xkv, wq, bq, wk, bk, wv, bv, wo, bo, tri, pad, n_heads):
    B, Sq, E = xq.shape
    Sk = xkv.shape[1]
    hd = E // n_heads
    q = (xq @ wq + bq).reshape(B, Sq, n_heads, hd).transpose(0, 2, 1, 3)
    k = (xkv @ wk + bk).reshape(B, Sk, n_heads, hd).transpose(0, 2, 1, 3)
    v = (xkv @ wv + bv).reshape(B, Sk, n_heads, hd).transpose(0, 2, 1, 3)
    e = jnp.einsum("bhse,bhke->bhsk", q, k) * (float(E) ** -0.5)
    keep = (tri[None, None] * pad[:, None, None, :]) > 0.5
    e = jnp.where(keep, e, NEG_MIN)
    p = jax.nn.softmax(e, axis=-1)
    a = jnp.einsum("bhsk,bhke->bhse", p, v).transpose(0, 2, 1, 3).reshape(B, Sq, E)
    return a @ wo + bo


def _ref_ln(y, g, b):
    mu = jnp.mean(y, axis=-1, keepdims=True)
    var = jnp.mean((y - mu) ** 2, axis=-1, keepdims=True)
    return (y - mu) * jax.lax.rsqrt(var + LN_EPS) * g + b


def decoder_block_ref(x, enc_out, pad_mask, p, n_heads):
    B, S, E = x.shape
    tri = jnp.tril(jnp.ones((S, S), jnp.float32))
    no_tri = jnp.ones((S, enc_out.shape[1]), jnp.float32)
    pad = pad_mask.astype(jnp.float32)

    a1 = _ref_attn(x, x, p["wq1"], p["bq1"], p["wk1"], p["bk1"],
                   p["wv1"], p["bv1"], p["wo1"], p["bo1"], tri, pad, n_heads)
    h1 = _ref_ln(a1 + x, p["g1"], p["be1"])
    a2 = _ref_attn(h1, enc_out, p["wq2"], p["bq2"], p["wk2"], p["bk2"],
                   p["wv2"], p["bv2"], p["wo2"], p["bo2"], no_tri, pad, n_heads)
    h2 = _ref_ln(a2 + h1, p["g2"], p["be2"])
    ff = jnp.maximum(h2 @ p["w1"] + p["b1"], 0.0) @ p["w2"] + p["b2"]
    return ff + h2


# ---------------------------------------------------------------------------
# Main
# ---------------------------------------------------------------------------

if __name__ == "__main__":
    B, S, E, HEADS = 2, 8, 32, 4    # dim_in = embed_size = enc_out_dim = 32

    key = jax.random.PRNGKey(0)
    keys = jax.random.split(key, 32)
    ki = iter(range(32))

    def w(shape, scale=0.1):
        return (scale * jax.random.normal(keys[next(ki)], shape)).astype(jnp.float32)

    params = {
        # self-attention
        "wq1": w((E, E)), "bq1": w((1, E)),
        "wk1": w((E, E)), "bk1": w((1, E)),
        "wv1": w((E, E)), "bv1": w((1, E)),
        "wo1": w((E, E)), "bo1": w((1, E)),
        "g1": 1.0 + w((1, E)), "be1": w((1, E)),
        # cross-attention
        "wq2": w((E, E)), "bq2": w((1, E)),
        "wk2": w((E, E)), "bk2": w((1, E)),
        "wv2": w((E, E)), "bv2": w((1, E)),
        "wo2": w((E, E)), "bo2": w((1, E)),
        "g2": 1.0 + w((1, E)), "be2": w((1, E)),
        # feed-forward
        "w1": w((E, 4 * E)), "b1": w((1, 4 * E)),
        "w2": w((4 * E, E)), "b2": w((1, E)),
    }

    x = jax.random.normal(keys[next(ki)], (B, S, E), jnp.float32)
    enc_out = jax.random.normal(keys[next(ki)], (B, S, E), jnp.float32)
    # padding mask: True = valid token; batch 1 has its last 2 positions padded
    pad_mask = jnp.array([[1] * S, [1] * (S - 2) + [0, 0]], dtype=jnp.bool_)

    fused = fuse_decoder_params(params, HEADS)          # one-time fusion/scale-fold/bf16

    out = decoder_block_pallas(x, enc_out, pad_mask, fused, HEADS)
    out = jax.block_until_ready(out)

    ref = jax.block_until_ready(decoder_block_ref(x, enc_out, pad_mask, params, HEADS))
    # 5e-2 tolerance: bf16-rounded MXU inputs (weights + activations) across 7 chained
    # matmuls + 2 LayerNorms, plus the approx EUP reciprocal in the softmax denominator;
    # accumulation is f32 so this is the usual bf16-input rounding, not accumulation error.
    np.testing.assert_allclose(np.asarray(out), np.asarray(ref), rtol=5e-2, atol=5e-2)

    # TODO(synk): dropout layers are identity here (inference semantics); stateful
    # train-time dropout would need pltpu.prng_* inside the kernel.
    print("KERNEL_OK")
</pallas_src>

<mosaic_0001>
module attributes {stable_mosaic.version = 11 : i64} {
  func.func @_decoder_block_kernel(%arg0: i32, %arg1: memref<2x8x32xf32, #tpu.memory_space<vmem>>, %arg2: memref<2x8x32xf32, #tpu.memory_space<vmem>>, %arg3: memref<2x8xf32, #tpu.memory_space<vmem>>, %arg4: memref<32x96xbf16, #tpu.memory_space<vmem>>, %arg5: memref<1x96xf32, #tpu.memory_space<vmem>>, %arg6: memref<4x8x32xbf16, #tpu.memory_space<vmem>>, %arg7: memref<1x32xf32, #tpu.memory_space<vmem>>, %arg8: memref<1x32xf32, #tpu.memory_space<vmem>>, %arg9: memref<1x32xf32, #tpu.memory_space<vmem>>, %arg10: memref<32x32xbf16, #tpu.memory_space<vmem>>, %arg11: memref<1x32xf32, #tpu.memory_space<vmem>>, %arg12: memref<32x64xbf16, #tpu.memory_space<vmem>>, %arg13: memref<1x64xf32, #tpu.memory_space<vmem>>, %arg14: memref<4x8x32xbf16, #tpu.memory_space<vmem>>, %arg15: memref<1x32xf32, #tpu.memory_space<vmem>>, %arg16: memref<1x32xf32, #tpu.memory_space<vmem>>, %arg17: memref<1x32xf32, #tpu.memory_space<vmem>>, %arg18: memref<32x128xbf16, #tpu.memory_space<vmem>>, %arg19: memref<1x128xf32, #tpu.memory_space<vmem>>, %arg20: memref<128x32xbf16, #tpu.memory_space<vmem>>, %arg21: memref<1x32xf32, #tpu.memory_space<vmem>>, %arg22: memref<2x8x32xf32, #tpu.memory_space<vmem>>) attributes {dimension_semantics = [#tpu.dimension_semantics<parallel>], iteration_bounds = array<i64: 1>, scalar_prefetch = 0 : i64, scratch_operands = 0 : i64, tpu.core_type = #tpu.core_type<tc>, window_params = [{transform_indices = @transform_0, window_bounds = array<i64: 2, 8, 32>}, {transform_indices = @transform_1, window_bounds = array<i64: 2, 8, 32>}, {transform_indices = @transform_2, window_bounds = array<i64: 2, 8>}, {pipeline_mode = #tpu.pipeline_mode<synchronous>, transform_indices = @transform_3, window_bounds = array<i64: 32, 96>}, {pipeline_mode = #tpu.pipeline_mode<synchronous>, transform_indices = @transform_4, window_bounds = array<i64: 1, 96>}, {pipeline_mode = #tpu.pipeline_mode<synchronous>, transform_indices = @transform_5, window_bounds = array<i64: 4, 8, 32>}, {pipeline_mode = #tpu.pipeline_mode<synchronous>, transform_indices = @transform_6, window_bounds = array<i64: 1, 32>}, {pipeline_mode = #tpu.pipeline_mode<synchronous>, transform_indices = @transform_7, window_bounds = array<i64: 1, 32>}, {pipeline_mode = #tpu.pipeline_mode<synchronous>, transform_indices = @transform_8, window_bounds = array<i64: 1, 32>}, {pipeline_mode = #tpu.pipeline_mode<synchronous>, transform_indices = @transform_9, window_bounds = array<i64: 32, 32>}, {pipeline_mode = #tpu.pipeline_mode<synchronous>, transform_indices = @transform_10, window_bounds = array<i64: 1, 32>}, {pipeline_mode = #tpu.pipeline_mode<synchronous>, transform_indices = @transform_11, window_bounds = array<i64: 32, 64>}, {pipeline_mode = #tpu.pipeline_mode<synchronous>, transform_indices = @transform_12, window_bounds = array<i64: 1, 64>}, {pipeline_mode = #tpu.pipeline_mode<synchronous>, transform_indices = @transform_13, window_bounds = array<i64: 4, 8, 32>}, {pipeline_mode = #tpu.pipeline_mode<synchronous>, transform_indices = @transform_14, window_bounds = array<i64: 1, 32>}, {pipeline_mode = #tpu.pipeline_mode<synchronous>, transform_indices = @transform_15, window_bounds = array<i64: 1, 32>}, {pipeline_mode = #tpu.pipeline_mode<synchronous>, transform_indices = @transform_16, window_bounds = array<i64: 1, 32>}, {pipeline_mode = #tpu.pipeline_mode<synchronous>, transform_indices = @transform_17, window_bounds = array<i64: 32, 128>}, {pipeline_mode = #tpu.pipeline_mode<synchronous>, transform_indices = @transform_18, window_bounds = array<i64: 1, 128>}, {pipeline_mode = #tpu.pipeline_mode<synchronous>, transform_indices = @transform_19, window_bounds = array<i64: 128, 32>}, {pipeline_mode = #tpu.pipeline_mode<synchronous>, transform_indices = @transform_20, window_bounds = array<i64: 1, 32>}, {transform_indices = @transform_21, window_bounds = array<i64: 2, 8, 32>}]} {
    %c0 = arith.constant 0 : index
    %c0_0 = arith.constant 0 : index
    %c0_1 = arith.constant 0 : index
    %0 = vector.load %arg1[%c0, %c0_0, %c0_1] : memref<2x8x32xf32, #tpu.memory_space<vmem>>, vector<2x8x32xf32>
    %1 = vector.shape_cast %0 : vector<2x8x32xf32> to vector<16x32xf32>
    %c0_2 = arith.constant 0 : index
    %c0_3 = arith.constant 0 : index
    %c0_4 = arith.constant 0 : index
    %2 = vector.load %arg2[%c0_2, %c0_3, %c0_4] : memref<2x8x32xf32, #tpu.memory_space<vmem>>, vector<2x8x32xf32>
    %3 = vector.shape_cast %2 : vector<2x8x32xf32> to vector<16x32xf32>
    %c0_5 = arith.constant 0 : index
    %c0_6 = arith.constant 0 : index
    %4 = vector.load %arg3[%c0_5, %c0_6] : memref<2x8xf32, #tpu.memory_space<vmem>>, vector<2x8xf32>
    %cst = arith.constant 5.000000e-01 : f32
    %5 = vector.broadcast %cst : f32 to vector<2x8xf32>
    %6 = arith.cmpf ogt, %4, %5 : vector<2x8xf32>
    %7 = tpu.iota {dimensions = array<i32: 0>} : vector<8x8xi32>
    %8 = tpu.iota {dimensions = array<i32: 1>} : vector<8x8xi32>
    %9 = arith.cmpi sge, %7, %8 : vector<8x8xi32>
    %10 = vector.shape_cast %6 : vector<2x8xi1> to vector<2x1x8xi1>
    %11 = vector.shape_cast %9 : vector<8x8xi1> to vector<1x8x8xi1>
    %12 = vector.broadcast %11 : vector<1x8x8xi1> to vector<2x8x8xi1>
    %13 = vector.broadcast %10 : vector<2x1x8xi1> to vector<2x8x8xi1>
    %14 = arith.andi %12, %13 : vector<2x8x8xi1>
    %15 = vector.shape_cast %6 : vector<2x8xi1> to vector<2x1x8xi1>
    %16 = arith.truncf %1 : vector<16x32xf32> to vector<16x32xbf16>
    %c0_7 = arith.constant 0 : index
    %c0_8 = arith.constant 0 : index
    %17 = vector.load %arg4[%c0_7, %c0_8] : memref<32x96xbf16, #tpu.memory_space<vmem>>, vector<32x96xbf16>
    %cst_9 = arith.constant dense<0.000000e+00> : vector<16x96xf32>
    %18 = tpu.matmul %16, %17, %cst_9 {dimension_numbers = #tpu.dot_dimension_numbers<[1], [0], [0], [1], [0, 0, 1, 1], [], []>} : vector<16x32xbf16>, vector<32x96xbf16>, vector<16x96xf32> -> vector<16x96xf32>
    %c0_10 = arith.constant 0 : index
    %c0_11 = arith.constant 0 : index
    %19 = vector.load %arg5[%c0_10, %c0_11] : memref<1x96xf32, #tpu.memory_space<vmem>>, vector<1x96xf32>
    %20 = vector.broadcast %19 : vector<1x96xf32> to vector<16x96xf32>
    %21 = arith.addf %18, %20 : vector<16x96xf32>
    %22 = vector.extract_strided_slice %21 {offsets = [0, 0], sizes = [16, 32], strides = [1, 1]} : vector<16x96xf32> to vector<16x32xf32>
    %23 = vector.extract_strided_slice %21 {offsets = [0, 32], sizes = [16, 32], strides = [1, 1]} : vector<16x96xf32> to vector<16x32xf32>
    %24 = vector.extract_strided_slice %21 {offsets = [0, 64], sizes = [16, 32], strides = [1, 1]} : vector<16x96xf32> to vector<16x32xf32>
    %c0_12 = arith.constant 0 : index
    %c0_13 = arith.constant 0 : index
    %c0_14 = arith.constant 0 : index
    %25 = vector.load %arg6[%c0_12, %c0_13, %c0_14] : memref<4x8x32xbf16, #tpu.memory_space<vmem>>, vector<4x8x32xbf16>
    %c0_15 = arith.constant 0 : index
    %c0_16 = arith.constant 0 : index
    %26 = vector.load %arg7[%c0_15, %c0_16] : memref<1x32xf32, #tpu.memory_space<vmem>>, vector<1x32xf32>
    %27 = vector.shape_cast %22 : vector<16x32xf32> to vector<2x8x32xf32>
    %28 = arith.truncf %27 : vector<2x8x32xf32> to vector<2x8x32xbf16>
    %29 = vector.shape_cast %23 : vector<16x32xf32> to vector<2x8x32xf32>
    %30 = arith.truncf %29 : vector<2x8x32xf32> to vector<2x8x32xbf16>
    %31 = vector.shape_cast %24 : vector<16x32xf32> to vector<2x8x32xf32>
    %32 = arith.truncf %31 : vector<2x8x32xf32> to vector<2x8x32xbf16>
    %cst_17 = arith.constant 0.000000e+00 : f32
    %33 = vector.broadcast %cst_17 : f32 to vector<16x32xf32>
    %34 = vector.extract_strided_slice %28 {offsets = [0, 0, 0], sizes = [2, 8, 8], strides = [1, 1, 1]} : vector<2x8x32xbf16> to vector<2x8x8xbf16>
    %35 = vector.extract_strided_slice %30 {offsets = [0, 0, 0], sizes = [2, 8, 8], strides = [1, 1, 1]} : vector<2x8x32xbf16> to vector<2x8x8xbf16>
    "tpu.trace_start"() <{level = 10 : i32, message = "bqd,bkd->bqk"}> : () -> ()
    %cst_18 = arith.constant dense<0.000000e+00> : vector<2x8x8xf32>
    %36 = tpu.matmul %34, %35, %cst_18 {dimension_numbers = #tpu.dot_dimension_numbers<[2], [2], [1], [1], [0, 0, 0, 1, 1, 1], [0], [0]>} : vector<2x8x8xbf16>, vector<2x8x8xbf16>, vector<2x8x8xf32> -> vector<2x8x8xf32>
    %cst_19 = arith.constant -1.000000e+30 : f32
    "tpu.trace_stop"() : () -> ()
    %37 = vector.broadcast %cst_19 : f32 to vector<2x8x8xf32>
    %38 = arith.select %14, %36, %37 : vector<2x8x8xi1>, vector<2x8x8xf32>
    %cst_20 = arith.constant dense<0xFF800000> : vector<2x8xf32>
    %39 = vector.multi_reduction <maximumf>, %38, %cst_20 [2] : vector<2x8x8xf32> to vector<2x8xf32>
    %40 = vector.shape_cast %39 : vector<2x8xf32> to vector<2x8x1xf32>
    %41 = vector.broadcast %40 : vector<2x8x1xf32> to vector<2x8x8xf32>
    %42 = arith.subf %38, %41 : vector<2x8x8xf32>
    %43 = math.exp %42 : vector<2x8x8xf32>
    %cst_21 = arith.constant dense<0.000000e+00> : vector<2x8xf32>
    %44 = vector.multi_reduction <add>, %43, %cst_21 [2] : vector<2x8x8xf32> to vector<2x8xf32>
    %45 = vector.shape_cast %44 : vector<2x8xf32> to vector<2x8x1xf32>
    %46 = tpu.reciprocal %45 {approx = true} : vector<2x8x1xf32> -> vector<2x8x1xf32>
    %47 = vector.broadcast %46 : vector<2x8x1xf32> to vector<2x8x8xf32>
    %48 = arith.mulf %43, %47 : vector<2x8x8xf32>
    %49 = arith.truncf %48 : vector<2x8x8xf32> to vector<2x8x8xbf16>
    %50 = vector.extract_strided_slice %32 {offsets = [0, 0, 0], sizes = [2, 8, 8], strides = [1, 1, 1]} : vector<2x8x32xbf16> to vector<2x8x8xbf16>
    "tpu.trace_start"() <{level = 10 : i32, message = "bqk,bkd->bqd"}> : () -> ()
    %cst_22 = arith.constant dense<0.000000e+00> : vector<2x8x8xf32>
    %51 = tpu.matmul %49, %50, %cst_22 {dimension_numbers = #tpu.dot_dimension_numbers<[2], [1], [1], [2], [0, 0, 0, 1, 1, 2], [0], [0]>} : vector<2x8x8xbf16>, vector<2x8x8xbf16>, vector<2x8x8xf32> -> vector<2x8x8xf32>
    "tpu.trace_stop"() : () -> ()
    %52 = vector.shape_cast %51 : vector<2x8x8xf32> to vector<16x8xf32>
    %53 = arith.truncf %52 : vector<16x8xf32> to vector<16x8xbf16>
    %54 = vector.extract_strided_slice %25 {offsets = [0, 0, 0], sizes = [1, 8, 32], strides = [1, 1, 1]} : vector<4x8x32xbf16> to vector<1x8x32xbf16>
    %55 = vector.shape_cast %54 : vector<1x8x32xbf16> to vector<8x32xbf16>
    %cst_23 = arith.constant dense<0.000000e+00> : vector<16x32xf32>
    %56 = tpu.matmul %53, %55, %cst_23 {dimension_numbers = #tpu.dot_dimension_numbers<[1], [0], [0], [1], [0, 0, 1, 1], [], []>} : vector<16x8xbf16>, vector<8x32xbf16>, vector<16x32xf32> -> vector<16x32xf32>
    %57 = arith.addf %33, %56 : vector<16x32xf32>
    %58 = vector.extract_strided_slice %28 {offsets = [0, 0, 8], sizes = [2, 8, 8], strides = [1, 1, 1]} : vector<2x8x32xbf16> to vector<2x8x8xbf16>
    %59 = vector.extract_strided_slice %30 {offsets = [0, 0, 8], sizes = [2, 8, 8], strides = [1, 1, 1]} : vector<2x8x32xbf16> to vector<2x8x8xbf16>
    "tpu.trace_start"() <{level = 10 : i32, message = "bqd,bkd->bqk"}> : () -> ()
    %cst_24 = arith.constant dense<0.000000e+00> : vector<2x8x8xf32>
    %60 = tpu.matmul %58, %59, %cst_24 {dimension_numbers = #tpu.dot_dimension_numbers<[2], [2], [1], [1], [0, 0, 0, 1, 1, 1], [0], [0]>} : vector<2x8x8xbf16>, vector<2x8x8xbf16>, vector<2x8x8xf32> -> vector<2x8x8xf32>
    %cst_25 = arith.constant -1.000000e+30 : f32
    "tpu.trace_stop"() : () -> ()
    %61 = vector.broadcast %cst_25 : f32 to vector<2x8x8xf32>
    %62 = arith.select %14, %60, %61 : vector<2x8x8xi1>, vector<2x8x8xf32>
    %cst_26 = arith.constant dense<0xFF800000> : vector<2x8xf32>
    %63 = vector.multi_reduction <maximumf>, %62, %cst_26 [2] : vector<2x8x8xf32> to vector<2x8xf32>
    %64 = vector.shape_cast %63 : vector<2x8xf32> to vector<2x8x1xf32>
    %65 = vector.broadcast %64 : vector<2x8x1xf32> to vector<2x8x8xf32>
    %66 = arith.subf %62, %65 : vector<2x8x8xf32>
    %67 = math.exp %66 : vector<2x8x8xf32>
    %cst_27 = arith.constant dense<0.000000e+00> : vector<2x8xf32>
    %68 = vector.multi_reduction <add>, %67, %cst_27 [2] : vector<2x8x8xf32> to vector<2x8xf32>
    %69 = vector.shape_cast %68 : vector<2x8xf32> to vector<2x8x1xf32>
    %70 = tpu.reciprocal %69 {approx = true} : vector<2x8x1xf32> -> vector<2x8x1xf32>
    %71 = vector.broadcast %70 : vector<2x8x1xf32> to vector<2x8x8xf32>
    %72 = arith.mulf %67, %71 : vector<2x8x8xf32>
    %73 = arith.truncf %72 : vector<2x8x8xf32> to vector<2x8x8xbf16>
    %74 = vector.extract_strided_slice %32 {offsets = [0, 0, 8], sizes = [2, 8, 8], strides = [1, 1, 1]} : vector<2x8x32xbf16> to vector<2x8x8xbf16>
    "tpu.trace_start"() <{level = 10 : i32, message = "bqk,bkd->bqd"}> : () -> ()
    %cst_28 = arith.constant dense<0.000000e+00> : vector<2x8x8xf32>
    %75 = tpu.matmul %73, %74, %cst_28 {dimension_numbers = #tpu.dot_dimension_numbers<[2], [1], [1], [2], [0, 0, 0, 1, 1, 2], [0], [0]>} : vector<2x8x8xbf16>, vector<2x8x8xbf16>, vector<2x8x8xf32> -> vector<2x8x8xf32>
    "tpu.trace_stop"() : () -> ()
    %76 = vector.shape_cast %75 : vector<2x8x8xf32> to vector<16x8xf32>
    %77 = arith.truncf %76 : vector<16x8xf32> to vector<16x8xbf16>
    %78 = vector.extract_strided_slice %25 {offsets = [1, 0, 0], sizes = [1, 8, 32], strides = [1, 1, 1]} : vector<4x8x32xbf16> to vector<1x8x32xbf16>
    %79 = vector.shape_cast %78 : vector<1x8x32xbf16> to vector<8x32xbf16>
    %cst_29 = arith.constant dense<0.000000e+00> : vector<16x32xf32>
    %80 = tpu.matmul %77, %79, %cst_29 {dimension_numbers = #tpu.dot_dimension_numbers<[1], [0], [0], [1], [0, 0, 1, 1], [], []>} : vector<16x8xbf16>, vector<8x32xbf16>, vector<16x32xf32> -> vector<16x32xf32>
    %81 = arith.addf %57, %80 : vector<16x32xf32>
    %82 = vector.extract_strided_slice %28 {offsets = [0, 0, 16], sizes = [2, 8, 8], strides = [1, 1, 1]} : vector<2x8x32xbf16> to vector<2x8x8xbf16>
    %83 = vector.extract_strided_slice %30 {offsets = [0, 0, 16], sizes = [2, 8, 8], strides = [1, 1, 1]} : vector<2x8x32xbf16> to vector<2x8x8xbf16>
    "tpu.trace_start"() <{level = 10 : i32, message = "bqd,bkd->bqk"}> : () -> ()
    %cst_30 = arith.constant dense<0.000000e+00> : vector<2x8x8xf32>
    %84 = tpu.matmul %82, %83, %cst_30 {dimension_numbers = #tpu.dot_dimension_numbers<[2], [2], [1], [1], [0, 0, 0, 1, 1, 1], [0], [0]>} : vector<2x8x8xbf16>, vector<2x8x8xbf16>, vector<2x8x8xf32> -> vector<2x8x8xf32>
    %cst_31 = arith.constant -1.000000e+30 : f32
    "tpu.trace_stop"() : () -> ()
    %85 = vector.broadcast %cst_31 : f32 to vector<2x8x8xf32>
    %86 = arith.select %14, %84, %85 : vector<2x8x8xi1>, vector<2x8x8xf32>
    %cst_32 = arith.constant dense<0xFF800000> : vector<2x8xf32>
    %87 = vector.multi_reduction <maximumf>, %86, %cst_32 [2] : vector<2x8x8xf32> to vector<2x8xf32>
    %88 = vector.shape_cast %87 : vector<2x8xf32> to vector<2x8x1xf32>
    %89 = vector.broadcast %88 : vector<2x8x1xf32> to vector<2x8x8xf32>
    %90 = arith.subf %86, %89 : vector<2x8x8xf32>
    %91 = math.exp %90 : vector<2x8x8xf32>
    %cst_33 = arith.constant dense<0.000000e+00> : vector<2x8xf32>
    %92 = vector.multi_reduction <add>, %91, %cst_33 [2] : vector<2x8x8xf32> to vector<2x8xf32>
    %93 = vector.shape_cast %92 : vector<2x8xf32> to vector<2x8x1xf32>
    %94 = tpu.reciprocal %93 {approx = true} : vector<2x8x1xf32> -> vector<2x8x1xf32>
    %95 = vector.broadcast %94 : vector<2x8x1xf32> to vector<2x8x8xf32>
    %96 = arith.mulf %91, %95 : vector<2x8x8xf32>
    %97 = arith.truncf %96 : vector<2x8x8xf32> to vector<2x8x8xbf16>
    %98 = vector.extract_strided_slice %32 {offsets = [0, 0, 16], sizes = [2, 8, 8], strides = [1, 1, 1]} : vector<2x8x32xbf16> to vector<2x8x8xbf16>
    "tpu.trace_start"() <{level = 10 : i32, message = "bqk,bkd->bqd"}> : () -> ()
    %cst_34 = arith.constant dense<0.000000e+00> : vector<2x8x8xf32>
    %99 = tpu.matmul %97, %98, %cst_34 {dimension_numbers = #tpu.dot_dimension_numbers<[2], [1], [1], [2], [0, 0, 0, 1, 1, 2], [0], [0]>} : vector<2x8x8xbf16>, vector<2x8x8xbf16>, vector<2x8x8xf32> -> vector<2x8x8xf32>
    "tpu.trace_stop"() : () -> ()
    %100 = vector.shape_cast %99 : vector<2x8x8xf32> to vector<16x8xf32>
    %101 = arith.truncf %100 : vector<16x8xf32> to vector<16x8xbf16>
    %102 = vector.extract_strided_slice %25 {offsets = [2, 0, 0], sizes = [1, 8, 32], strides = [1, 1, 1]} : vector<4x8x32xbf16> to vector<1x8x32xbf16>
    %103 = vector.shape_cast %102 : vector<1x8x32xbf16> to vector<8x32xbf16>
    %cst_35 = arith.constant dense<0.000000e+00> : vector<16x32xf32>
    %104 = tpu.matmul %101, %103, %cst_35 {dimension_numbers = #tpu.dot_dimension_numbers<[1], [0], [0], [1], [0, 0, 1, 1], [], []>} : vector<16x8xbf16>, vector<8x32xbf16>, vector<16x32xf32> -> vector<16x32xf32>
    %105 = arith.addf %81, %104 : vector<16x32xf32>
    %106 = vector.extract_strided_slice %28 {offsets = [0, 0, 24], sizes = [2, 8, 8], strides = [1, 1, 1]} : vector<2x8x32xbf16> to vector<2x8x8xbf16>
    %107 = vector.extract_strided_slice %30 {offsets = [0, 0, 24], sizes = [2, 8, 8], strides = [1, 1, 1]} : vector<2x8x32xbf16> to vector<2x8x8xbf16>
    "tpu.trace_start"() <{level = 10 : i32, message = "bqd,bkd->bqk"}> : () -> ()
    %cst_36 = arith.constant dense<0.000000e+00> : vector<2x8x8xf32>
    %108 = tpu.matmul %106, %107, %cst_36 {dimension_numbers = #tpu.dot_dimension_numbers<[2], [2], [1], [1], [0, 0, 0, 1, 1, 1], [0], [0]>} : vector<2x8x8xbf16>, vector<2x8x8xbf16>, vector<2x8x8xf32> -> vector<2x8x8xf32>
    %cst_37 = arith.constant -1.000000e+30 : f32
    "tpu.trace_stop"() : () -> ()
    %109 = vector.broadcast %cst_37 : f32 to vector<2x8x8xf32>
    %110 = arith.select %14, %108, %109 : vector<2x8x8xi1>, vector<2x8x8xf32>
    %cst_38 = arith.constant dense<0xFF800000> : vector<2x8xf32>
    %111 = vector.multi_reduction <maximumf>, %110, %cst_38 [2] : vector<2x8x8xf32> to vector<2x8xf32>
    %112 = vector.shape_cast %111 : vector<2x8xf32> to vector<2x8x1xf32>
    %113 = vector.broadcast %112 : vector<2x8x1xf32> to vector<2x8x8xf32>
    %114 = arith.subf %110, %113 : vector<2x8x8xf32>
    %115 = math.exp %114 : vector<2x8x8xf32>
    %cst_39 = arith.constant dense<0.000000e+00> : vector<2x8xf32>
    %116 = vector.multi_reduction <add>, %115, %cst_39 [2] : vector<2x8x8xf32> to vector<2x8xf32>
    %117 = vector.shape_cast %116 : vector<2x8xf32> to vector<2x8x1xf32>
    %118 = tpu.reciprocal %117 {approx = true} : vector<2x8x1xf32> -> vector<2x8x1xf32>
    %119 = vector.broadcast %118 : vector<2x8x1xf32> to vector<2x8x8xf32>
    %120 = arith.mulf %115, %119 : vector<2x8x8xf32>
    %121 = arith.truncf %120 : vector<2x8x8xf32> to vector<2x8x8xbf16>
    %122 = vector.extract_strided_slice %32 {offsets = [0, 0, 24], sizes = [2, 8, 8], strides = [1, 1, 1]} : vector<2x8x32xbf16> to vector<2x8x8xbf16>
    "tpu.trace_start"() <{level = 10 : i32, message = "bqk,bkd->bqd"}> : () -> ()
    %cst_40 = arith.constant dense<0.000000e+00> : vector<2x8x8xf32>
    %123 = tpu.matmul %121, %122, %cst_40 {dimension_numbers = #tpu.dot_dimension_numbers<[2], [1], [1], [2], [0, 0, 0, 1, 1, 2], [0], [0]>} : vector<2x8x8xbf16>, vector<2x8x8xbf16>, vector<2x8x8xf32> -> vector<2x8x8xf32>
    "tpu.trace_stop"() : () -> ()
    %124 = vector.shape_cast %123 : vector<2x8x8xf32> to vector<16x8xf32>
    %125 = arith.truncf %124 : vector<16x8xf32> to vector<16x8xbf16>
    %126 = vector.extract_strided_slice %25 {offsets = [3, 0, 0], sizes = [1, 8, 32], strides = [1, 1, 1]} : vector<4x8x32xbf16> to vector<1x8x32xbf16>
    %127 = vector.shape_cast %126 : vector<1x8x32xbf16> to vector<8x32xbf16>
    %cst_41 = arith.constant dense<0.000000e+00> : vector<16x32xf32>
    %128 = tpu.matmul %125, %127, %cst_41 {dimension_numbers = #tpu.dot_dimension_numbers<[1], [0], [0], [1], [0, 0, 1, 1], [], []>} : vector<16x8xbf16>, vector<8x32xbf16>, vector<16x32xf32> -> vector<16x32xf32>
    %129 = arith.addf %105, %128 : vector<16x32xf32>
    %130 = vector.broadcast %26 : vector<1x32xf32> to vector<16x32xf32>
    %131 = arith.addf %129, %130 : vector<16x32xf32>
    %132 = arith.addf %131, %1 : vector<16x32xf32>
    %c0_42 = arith.constant 0 : index
    %c0_43 = arith.constant 0 : index
    %133 = vector.load %arg8[%c0_42, %c0_43] : memref<1x32xf32, #tpu.memory_space<vmem>>, vector<1x32xf32>
    %c0_44 = arith.constant 0 : index
    %c0_45 = arith.constant 0 : index
    %134 = vector.load %arg9[%c0_44, %c0_45] : memref<1x32xf32, #tpu.memory_space<vmem>>, vector<1x32xf32>
    %cst_46 = arith.constant dense<0.000000e+00> : vector<16xf32>
    %135 = vector.multi_reduction <add>, %132, %cst_46 [1] : vector<16x32xf32> to vector<16xf32>
    %136 = vector.shape_cast %135 : vector<16xf32> to vector<16x1xf32>
    %cst_47 = arith.constant 3.200000e+01 : f32
    %137 = vector.broadcast %cst_47 : f32 to vector<16x1xf32>
    %138 = arith.divf %136, %137 : vector<16x1xf32>
    %139 = vector.broadcast %138 : vector<16x1xf32> to vector<16x32xf32>
    %140 = arith.subf %132, %139 : vector<16x32xf32>
    %141 = arith.mulf %140, %140 : vector<16x32xf32>
    %cst_48 = arith.constant dense<0.000000e+00> : vector<16xf32>
    %142 = vector.multi_reduction <add>, %141, %cst_48 [1] : vector<16x32xf32> to vector<16xf32>
    %143 = vector.shape_cast %142 : vector<16xf32> to vector<16x1xf32>
    %cst_49 = arith.constant 3.200000e+01 : f32
    %144 = vector.broadcast %cst_49 : f32 to vector<16x1xf32>
    %145 = arith.divf %143, %144 : vector<16x1xf32>
    %146 = vector.broadcast %138 : vector<16x1xf32> to vector<16x32xf32>
    %147 = arith.subf %132, %146 : vector<16x32xf32>
    %cst_50 = arith.constant 9.99999974E-6 : f32
    %148 = vector.broadcast %cst_50 : f32 to vector<16x1xf32>
    %149 = arith.addf %145, %148 : vector<16x1xf32>
    %150 = math.rsqrt %149 : vector<16x1xf32>
    %151 = vector.broadcast %150 : vector<16x1xf32> to vector<16x32xf32>
    %152 = arith.mulf %147, %151 : vector<16x32xf32>
    %153 = vector.broadcast %133 : vector<1x32xf32> to vector<16x32xf32>
    %154 = arith.mulf %152, %153 : vector<16x32xf32>
    %155 = vector.broadcast %134 : vector<1x32xf32> to vector<16x32xf32>
    %156 = arith.addf %154, %155 : vector<16x32xf32>
    %157 = arith.truncf %156 : vector<16x32xf32> to vector<16x32xbf16>
    %c0_51 = arith.constant 0 : index
    %c0_52 = arith.constant 0 : index
    %158 = vector.load %arg10[%c0_51, %c0_52] : memref<32x32xbf16, #tpu.memory_space<vmem>>, vector<32x32xbf16>
    %cst_53 = arith.constant dense<0.000000e+00> : vector<16x32xf32>
    %159 = tpu.matmul %157, %158, %cst_53 {dimension_numbers = #tpu.dot_dimension_numbers<[1], [0], [0], [1], [0, 0, 1, 1], [], []>} : vector<16x32xbf16>, vector<32x32xbf16>, vector<16x32xf32> -> vector<16x32xf32>
    %c0_54 = arith.constant 0 : index
    %c0_55 = arith.constant 0 : index
    %160 = vector.load %arg11[%c0_54, %c0_55] : memref<1x32xf32, #tpu.memory_space<vmem>>, vector<1x32xf32>
    %161 = vector.broadcast %160 : vector<1x32xf32> to vector<16x32xf32>
    %162 = arith.addf %159, %161 : vector<16x32xf32>
    %163 = arith.truncf %3 : vector<16x32xf32> to vector<16x32xbf16>
    %c0_56 = arith.constant 0 : index
    %c0_57 = arith.constant 0 : index
    %164 = vector.load %arg12[%c0_56, %c0_57] : memref<32x64xbf16, #tpu.memory_space<vmem>>, vector<32x64xbf16>
    %cst_58 = arith.constant dense<0.000000e+00> : vector<16x64xf32>
    %165 = tpu.matmul %163, %164, %cst_58 {dimension_numbers = #tpu.dot_dimension_numbers<[1], [0], [0], [1], [0, 0, 1, 1], [], []>} : vector<16x32xbf16>, vector<32x64xbf16>, vector<16x64xf32> -> vector<16x64xf32>
    %c0_59 = arith.constant 0 : index
    %c0_60 = arith.constant 0 : index
    %166 = vector.load %arg13[%c0_59, %c0_60] : memref<1x64xf32, #tpu.memory_space<vmem>>, vector<1x64xf32>
    %167 = vector.broadcast %166 : vector<1x64xf32> to vector<16x64xf32>
    %168 = arith.addf %165, %167 : vector<16x64xf32>
    %169 = vector.extract_strided_slice %168 {offsets = [0, 0], sizes = [16, 32], strides = [1, 1]} : vector<16x64xf32> to vector<16x32xf32>
    %170 = vector.extract_strided_slice %168 {offsets = [0, 32], sizes = [16, 32], strides = [1, 1]} : vector<16x64xf32> to vector<16x32xf32>
    %c0_61 = arith.constant 0 : index
    %c0_62 = arith.constant 0 : index
    %c0_63 = arith.constant 0 : index
    %171 = vector.load %arg14[%c0_61, %c0_62, %c0_63] : memref<4x8x32xbf16, #tpu.memory_space<vmem>>, vector<4x8x32xbf16>
    %c0_64 = arith.constant 0 : index
    %c0_65 = arith.constant 0 : index
    %172 = vector.load %arg15[%c0_64, %c0_65] : memref<1x32xf32, #tpu.memory_space<vmem>>, vector<1x32xf32>
    %173 = vector.shape_cast %162 : vector<16x32xf32> to vector<2x8x32xf32>
    %174 = arith.truncf %173 : vector<2x8x32xf32> to vector<2x8x32xbf16>
    %175 = vector.shape_cast %169 : vector<16x32xf32> to vector<2x8x32xf32>
    %176 = arith.truncf %175 : vector<2x8x32xf32> to vector<2x8x32xbf16>
    %177 = vector.shape_cast %170 : vector<16x32xf32> to vector<2x8x32xf32>
    %178 = arith.truncf %177 : vector<2x8x32xf32> to vector<2x8x32xbf16>
    %cst_66 = arith.constant 0.000000e+00 : f32
    %179 = vector.broadcast %cst_66 : f32 to vector<16x32xf32>
    %180 = vector.extract_strided_slice %174 {offsets = [0, 0, 0], sizes = [2, 8, 8], strides = [1, 1, 1]} : vector<2x8x32xbf16> to vector<2x8x8xbf16>
    %181 = vector.extract_strided_slice %176 {offsets = [0, 0, 0], sizes = [2, 8, 8], strides = [1, 1, 1]} : vector<2x8x32xbf16> to vector<2x8x8xbf16>
    "tpu.trace_start"() <{level = 10 : i32, message = "bqd,bkd->bqk"}> : () -> ()
    %cst_67 = arith.constant dense<0.000000e+00> : vector<2x8x8xf32>
    %182 = tpu.matmul %180, %181, %cst_67 {dimension_numbers = #tpu.dot_dimension_numbers<[2], [2], [1], [1], [0, 0, 0, 1, 1, 1], [0], [0]>} : vector<2x8x8xbf16>, vector<2x8x8xbf16>, vector<2x8x8xf32> -> vector<2x8x8xf32>
    %cst_68 = arith.constant -1.000000e+30 : f32
    "tpu.trace_stop"() : () -> ()
    %183 = vector.shape_cast %15 : vector<2x1x8xi1> to vector<2x1x8xi1>
    %184 = vector.broadcast %183 : vector<2x1x8xi1> to vector<2x8x8xi1>
    %185 = vector.broadcast %cst_68 : f32 to vector<2x8x8xf32>
    %186 = arith.select %184, %182, %185 : vector<2x8x8xi1>, vector<2x8x8xf32>
    %cst_69 = arith.constant dense<0xFF800000> : vector<2x8xf32>
    %187 = vector.multi_reduction <maximumf>, %186, %cst_69 [2] : vector<2x8x8xf32> to vector<2x8xf32>
    %188 = vector.shape_cast %187 : vector<2x8xf32> to vector<2x8x1xf32>
    %189 = vector.broadcast %188 : vector<2x8x1xf32> to vector<2x8x8xf32>
    %190 = arith.subf %186, %189 : vector<2x8x8xf32>
    %191 = math.exp %190 : vector<2x8x8xf32>
    %cst_70 = arith.constant dense<0.000000e+00> : vector<2x8xf32>
    %192 = vector.multi_reduction <add>, %191, %cst_70 [2] : vector<2x8x8xf32> to vector<2x8xf32>
    %193 = vector.shape_cast %192 : vector<2x8xf32> to vector<2x8x1xf32>
    %194 = tpu.reciprocal %193 {approx = true} : vector<2x8x1xf32> -> vector<2x8x1xf32>
    %195 = vector.broadcast %194 : vector<2x8x1xf32> to vector<2x8x8xf32>
    %196 = arith.mulf %191, %195 : vector<2x8x8xf32>
    %197 = arith.truncf %196 : vector<2x8x8xf32> to vector<2x8x8xbf16>
    %198 = vector.extract_strided_slice %178 {offsets = [0, 0, 0], sizes = [2, 8, 8], strides = [1, 1, 1]} : vector<2x8x32xbf16> to vector<2x8x8xbf16>
    "tpu.trace_start"() <{level = 10 : i32, message = "bqk,bkd->bqd"}> : () -> ()
    %cst_71 = arith.constant dense<0.000000e+00> : vector<2x8x8xf32>
    %199 = tpu.matmul %197, %198, %cst_71 {dimension_numbers = #tpu.dot_dimension_numbers<[2], [1], [1], [2], [0, 0, 0, 1, 1, 2], [0], [0]>} : vector<2x8x8xbf16>, vector<2x8x8xbf16>, vector<2x8x8xf32> -> vector<2x8x8xf32>
    "tpu.trace_stop"() : () -> ()
    %200 = vector.shape_cast %199 : vector<2x8x8xf32> to vector<16x8xf32>
    %201 = arith.truncf %200 : vector<16x8xf32> to vector<16x8xbf16>
    %202 = vector.extract_strided_slice %171 {offsets = [0, 0, 0], sizes = [1, 8, 32], strides = [1, 1, 1]} : vector<4x8x32xbf16> to vector<1x8x32xbf16>
    %203 = vector.shape_cast %202 : vector<1x8x32xbf16> to vector<8x32xbf16>
    %cst_72 = arith.constant dense<0.000000e+00> : vector<16x32xf32>
    %204 = tpu.matmul %201, %203, %cst_72 {dimension_numbers = #tpu.dot_dimension_numbers<[1], [0], [0], [1], [0, 0, 1, 1], [], []>} : vector<16x8xbf16>, vector<8x32xbf16>, vector<16x32xf32> -> vector<16x32xf32>
    %205 = arith.addf %179, %204 : vector<16x32xf32>
    %206 = vector.extract_strided_slice %174 {offsets = [0, 0, 8], sizes = [2, 8, 8], strides = [1, 1, 1]} : vector<2x8x32xbf16> to vector<2x8x8xbf16>
    %207 = vector.extract_strided_slice %176 {offsets = [0, 0, 8], sizes = [2, 8, 8], strides = [1, 1, 1]} : vector<2x8x32xbf16> to vector<2x8x8xbf16>
    "tpu.trace_start"() <{level = 10 : i32, message = "bqd,bkd->bqk"}> : () -> ()
    %cst_73 = arith.constant dense<0.000000e+00> : vector<2x8x8xf32>
    %208 = tpu.matmul %206, %207, %cst_73 {dimension_numbers = #tpu.dot_dimension_numbers<[2], [2], [1], [1], [0, 0, 0, 1, 1, 1], [0], [0]>} : vector<2x8x8xbf16>, vector<2x8x8xbf16>, vector<2x8x8xf32> -> vector<2x8x8xf32>
    %cst_74 = arith.constant -1.000000e+30 : f32
    "tpu.trace_stop"() : () -> ()
    %209 = vector.shape_cast %15 : vector<2x1x8xi1> to vector<2x1x8xi1>
    %210 = vector.broadcast %209 : vector<2x1x8xi1> to vector<2x8x8xi1>
    %211 = vector.broadcast %cst_74 : f32 to vector<2x8x8xf32>
    %212 = arith.select %210, %208, %211 : vector<2x8x8xi1>, vector<2x8x8xf32>
    %cst_75 = arith.constant dense<0xFF800000> : vector<2x8xf32>
    %213 = vector.multi_reduction <maximumf>, %212, %cst_75 [2] : vector<2x8x8xf32> to vector<2x8xf32>
    %214 = vector.shape_cast %213 : vector<2x8xf32> to vector<2x8x1xf32>
    %215 = vector.broadcast %214 : vector<2x8x1xf32> to vector<2x8x8xf32>
    %216 = arith.subf %212, %215 : vector<2x8x8xf32>
    %217 = math.exp %216 : vector<2x8x8xf32>
    %cst_76 = arith.constant dense<0.000000e+00> : vector<2x8xf32>
    %218 = vector.multi_reduction <add>, %217, %cst_76 [2] : vector<2x8x8xf32> to vector<2x8xf32>
    %219 = vector.shape_cast %218 : vector<2x8xf32> to vector<2x8x1xf32>
    %220 = tpu.reciprocal %219 {approx = true} : vector<2x8x1xf32> -> vector<2x8x1xf32>
    %221 = vector.broadcast %220 : vector<2x8x1xf32> to vector<2x8x8xf32>
    %222 = arith.mulf %217, %221 : vector<2x8x8xf32>
    %223 = arith.truncf %222 : vector<2x8x8xf32> to vector<2x8x8xbf16>
    %224 = vector.extract_strided_slice %178 {offsets = [0, 0, 8], sizes = [2, 8, 8], strides = [1, 1, 1]} : vector<2x8x32xbf16> to vector<2x8x8xbf16>
    "tpu.trace_start"() <{level = 10 : i32, message = "bqk,bkd->bqd"}> : () -> ()
    %cst_77 = arith.constant dense<0.000000e+00> : vector<2x8x8xf32>
    %225 = tpu.matmul %223, %224, %cst_77 {dimension_numbers = #tpu.dot_dimension_numbers<[2], [1], [1], [2], [0, 0, 0, 1, 1, 2], [0], [0]>} : vector<2x8x8xbf16>, vector<2x8x8xbf16>, vector<2x8x8xf32> -> vector<2x8x8xf32>
    "tpu.trace_stop"() : () -> ()
    %226 = vector.shape_cast %225 : vector<2x8x8xf32> to vector<16x8xf32>
    %227 = arith.truncf %226 : vector<16x8xf32> to vector<16x8xbf16>
    %228 = vector.extract_strided_slice %171 {offsets = [1, 0, 0], sizes = [1, 8, 32], strides = [1, 1, 1]} : vector<4x8x32xbf16> to vector<1x8x32xbf16>
    %229 = vector.shape_cast %228 : vector<1x8x32xbf16> to vector<8x32xbf16>
    %cst_78 = arith.constant dense<0.000000e+00> : vector<16x32xf32>
    %230 = tpu.matmul %227, %229, %cst_78 {dimension_numbers = #tpu.dot_dimension_numbers<[1], [0], [0], [1], [0, 0, 1, 1], [], []>} : vector<16x8xbf16>, vector<8x32xbf16>, vector<16x32xf32> -> vector<16x32xf32>
    %231 = arith.addf %205, %230 : vector<16x32xf32>
    %232 = vector.extract_strided_slice %174 {offsets = [0, 0, 16], sizes = [2, 8, 8], strides = [1, 1, 1]} : vector<2x8x32xbf16> to vector<2x8x8xbf16>
    %233 = vector.extract_strided_slice %176 {offsets = [0, 0, 16], sizes = [2, 8, 8], strides = [1, 1, 1]} : vector<2x8x32xbf16> to vector<2x8x8xbf16>
    "tpu.trace_start"() <{level = 10 : i32, message = "bqd,bkd->bqk"}> : () -> ()
    %cst_79 = arith.constant dense<0.000000e+00> : vector<2x8x8xf32>
    %234 = tpu.matmul %232, %233, %cst_79 {dimension_numbers = #tpu.dot_dimension_numbers<[2], [2], [1], [1], [0, 0, 0, 1, 1, 1], [0], [0]>} : vector<2x8x8xbf16>, vector<2x8x8xbf16>, vector<2x8x8xf32> -> vector<2x8x8xf32>
    %cst_80 = arith.constant -1.000000e+30 : f32
    "tpu.trace_stop"() : () -> ()
    %235 = vector.shape_cast %15 : vector<2x1x8xi1> to vector<2x1x8xi1>
    %236 = vector.broadcast %235 : vector<2x1x8xi1> to vector<2x8x8xi1>
    %237 = vector.broadcast %cst_80 : f32 to vector<2x8x8xf32>
    %238 = arith.select %236, %234, %237 : vector<2x8x8xi1>, vector<2x8x8xf32>
    %cst_81 = arith.constant dense<0xFF800000> : vector<2x8xf32>
    %239 = vector.multi_reduction <maximumf>, %238, %cst_81 [2] : vector<2x8x8xf32> to vector<2x8xf32>
    %240 = vector.shape_cast %239 : vector<2x8xf32> to vector<2x8x1xf32>
    %241 = vector.broadcast %240 : vector<2x8x1xf32> to vector<2x8x8xf32>
    %242 = arith.subf %238, %241 : vector<2x8x8xf32>
    %243 = math.exp %242 : vector<2x8x8xf32>
    %cst_82 = arith.constant dense<0.000000e+00> : vector<2x8xf32>
    %244 = vector.multi_reduction <add>, %243, %cst_82 [2] : vector<2x8x8xf32> to vector<2x8xf32>
    %245 = vector.shape_cast %244 : vector<2x8xf32> to vector<2x8x1xf32>
    %246 = tpu.reciprocal %245 {approx = true} : vector<2x8x1xf32> -> vector<2x8x1xf32>
    %247 = vector.broadcast %246 : vector<2x8x1xf32> to vector<2x8x8xf32>
    %248 = arith.mulf %243, %247 : vector<2x8x8xf32>
    %249 = arith.truncf %248 : vector<2x8x8xf32> to vector<2x8x8xbf16>
    %250 = vector.extract_strided_slice %178 {offsets = [0, 0, 16], sizes = [2, 8, 8], strides = [1, 1, 1]} : vector<2x8x32xbf16> to vector<2x8x8xbf16>
    "tpu.trace_start"() <{level = 10 : i32, message = "bqk,bkd->bqd"}> : () -> ()
    %cst_83 = arith.constant dense<0.000000e+00> : vector<2x8x8xf32>
    %251 = tpu.matmul %249, %250, %cst_83 {dimension_numbers = #tpu.dot_dimension_numbers<[2], [1], [1], [2], [0, 0, 0, 1, 1, 2], [0], [0]>} : vector<2x8x8xbf16>, vector<2x8x8xbf16>, vector<2x8x8xf32> -> vector<2x8x8xf32>
    "tpu.trace_stop"() : () -> ()
    %252 = vector.shape_cast %251 : vector<2x8x8xf32> to vector<16x8xf32>
    %253 = arith.truncf %252 : vector<16x8xf32> to vector<16x8xbf16>
    %254 = vector.extract_strided_slice %171 {offsets = [2, 0, 0], sizes = [1, 8, 32], strides = [1, 1, 1]} : vector<4x8x32xbf16> to vector<1x8x32xbf16>
    %255 = vector.shape_cast %254 : vector<1x8x32xbf16> to vector<8x32xbf16>
    %cst_84 = arith.constant dense<0.000000e+00> : vector<16x32xf32>
    %256 = tpu.matmul %253, %255, %cst_84 {dimension_numbers = #tpu.dot_dimension_numbers<[1], [0], [0], [1], [0, 0, 1, 1], [], []>} : vector<16x8xbf16>, vector<8x32xbf16>, vector<16x32xf32> -> vector<16x32xf32>
    %257 = arith.addf %231, %256 : vector<16x32xf32>
    %258 = vector.extract_strided_slice %174 {offsets = [0, 0, 24], sizes = [2, 8, 8], strides = [1, 1, 1]} : vector<2x8x32xbf16> to vector<2x8x8xbf16>
    %259 = vector.extract_strided_slice %176 {offsets = [0, 0, 24], sizes = [2, 8, 8], strides = [1, 1, 1]} : vector<2x8x32xbf16> to vector<2x8x8xbf16>
    "tpu.trace_start"() <{level = 10 : i32, message = "bqd,bkd->bqk"}> : () -> ()
    %cst_85 = arith.constant dense<0.000000e+00> : vector<2x8x8xf32>
    %260 = tpu.matmul %258, %259, %cst_85 {dimension_numbers = #tpu.dot_dimension_numbers<[2], [2], [1], [1], [0, 0, 0, 1, 1, 1], [0], [0]>} : vector<2x8x8xbf16>, vector<2x8x8xbf16>, vector<2x8x8xf32> -> vector<2x8x8xf32>
    %cst_86 = arith.constant -1.000000e+30 : f32
    "tpu.trace_stop"() : () -> ()
    %261 = vector.shape_cast %15 : vector<2x1x8xi1> to vector<2x1x8xi1>
    %262 = vector.broadcast %261 : vector<2x1x8xi1> to vector<2x8x8xi1>
    %263 = vector.broadcast %cst_86 : f32 to vector<2x8x8xf32>
    %264 = arith.select %262, %260, %263 : vector<2x8x8xi1>, vector<2x8x8xf32>
    %cst_87 = arith.constant dense<0xFF800000> : vector<2x8xf32>
    %265 = vector.multi_reduction <maximumf>, %264, %cst_87 [2] : vector<2x8x8xf32> to vector<2x8xf32>
    %266 = vector.shape_cast %265 : vector<2x8xf32> to vector<2x8x1xf32>
    %267 = vector.broadcast %266 : vector<2x8x1xf32> to vector<2x8x8xf32>
    %268 = arith.subf %264, %267 : vector<2x8x8xf32>
    %269 = math.exp %268 : vector<2x8x8xf32>
    %cst_88 = arith.constant dense<0.000000e+00> : vector<2x8xf32>
    %270 = vector.multi_reduction <add>, %269, %cst_88 [2] : vector<2x8x8xf32> to vector<2x8xf32>
    %271 = vector.shape_cast %270 : vector<2x8xf32> to vector<2x8x1xf32>
    %272 = tpu.reciprocal %271 {approx = true} : vector<2x8x1xf32> -> vector<2x8x1xf32>
    %273 = vector.broadcast %272 : vector<2x8x1xf32> to vector<2x8x8xf32>
    %274 = arith.mulf %269, %273 : vector<2x8x8xf32>
    %275 = arith.truncf %274 : vector<2x8x8xf32> to vector<2x8x8xbf16>
    %276 = vector.extract_strided_slice %178 {offsets = [0, 0, 24], sizes = [2, 8, 8], strides = [1, 1, 1]} : vector<2x8x32xbf16> to vector<2x8x8xbf16>
    "tpu.trace_start"() <{level = 10 : i32, message = "bqk,bkd->bqd"}> : () -> ()
    %cst_89 = arith.constant dense<0.000000e+00> : vector<2x8x8xf32>
    %277 = tpu.matmul %275, %276, %cst_89 {dimension_numbers = #tpu.dot_dimension_numbers<[2], [1], [1], [2], [0, 0, 0, 1, 1, 2], [0], [0]>} : vector<2x8x8xbf16>, vector<2x8x8xbf16>, vector<2x8x8xf32> -> vector<2x8x8xf32>
    "tpu.trace_stop"() : () -> ()
    %278 = vector.shape_cast %277 : vector<2x8x8xf32> to vector<16x8xf32>
    %279 = arith.truncf %278 : vector<16x8xf32> to vector<16x8xbf16>
    %280 = vector.extract_strided_slice %171 {offsets = [3, 0, 0], sizes = [1, 8, 32], strides = [1, 1, 1]} : vector<4x8x32xbf16> to vector<1x8x32xbf16>
    %281 = vector.shape_cast %280 : vector<1x8x32xbf16> to vector<8x32xbf16>
    %cst_90 = arith.constant dense<0.000000e+00> : vector<16x32xf32>
    %282 = tpu.matmul %279, %281, %cst_90 {dimension_numbers = #tpu.dot_dimension_numbers<[1], [0], [0], [1], [0, 0, 1, 1], [], []>} : vector<16x8xbf16>, vector<8x32xbf16>, vector<16x32xf32> -> vector<16x32xf32>
    %283 = arith.addf %257, %282 : vector<16x32xf32>
    %284 = vector.broadcast %172 : vector<1x32xf32> to vector<16x32xf32>
    %285 = arith.addf %283, %284 : vector<16x32xf32>
    %286 = arith.addf %285, %156 : vector<16x32xf32>
    %c0_91 = arith.constant 0 : index
    %c0_92 = arith.constant 0 : index
    %287 = vector.load %arg16[%c0_91, %c0_92] : memref<1x32xf32, #tpu.memory_space<vmem>>, vector<1x32xf32>
    %c0_93 = arith.constant 0 : index
    %c0_94 = arith.constant 0 : index
    %288 = vector.load %arg17[%c0_93, %c0_94] : memref<1x32xf32, #tpu.memory_space<vmem>>, vector<1x32xf32>
    %cst_95 = arith.constant dense<0.000000e+00> : vector<16xf32>
    %289 = vector.multi_reduction <add>, %286, %cst_95 [1] : vector<16x32xf32> to vector<16xf32>
    %290 = vector.shape_cast %289 : vector<16xf32> to vector<16x1xf32>
    %cst_96 = arith.constant 3.200000e+01 : f32
    %291 = vector.broadcast %cst_96 : f32 to vector<16x1xf32>
    %292 = arith.divf %290, %291 : vector<16x1xf32>
    %293 = vector.broadcast %292 : vector<16x1xf32> to vector<16x32xf32>
    %294 = arith.subf %286, %293 : vector<16x32xf32>
    %295 = arith.mulf %294, %294 : vector<16x32xf32>
    %cst_97 = arith.constant dense<0.000000e+00> : vector<16xf32>
    %296 = vector.multi_reduction <add>, %295, %cst_97 [1] : vector<16x32xf32> to vector<16xf32>
    %297 = vector.shape_cast %296 : vector<16xf32> to vector<16x1xf32>
    %cst_98 = arith.constant 3.200000e+01 : f32
    %298 = vector.broadcast %cst_98 : f32 to vector<16x1xf32>
    %299 = arith.divf %297, %298 : vector<16x1xf32>
    %300 = vector.broadcast %292 : vector<16x1xf32> to vector<16x32xf32>
    %301 = arith.subf %286, %300 : vector<16x32xf32>
    %cst_99 = arith.constant 9.99999974E-6 : f32
    %302 = vector.broadcast %cst_99 : f32 to vector<16x1xf32>
    %303 = arith.addf %299, %302 : vector<16x1xf32>
    %304 = math.rsqrt %303 : vector<16x1xf32>
    %305 = vector.broadcast %304 : vector<16x1xf32> to vector<16x32xf32>
    %306 = arith.mulf %301, %305 : vector<16x32xf32>
    %307 = vector.broadcast %287 : vector<1x32xf32> to vector<16x32xf32>
    %308 = arith.mulf %306, %307 : vector<16x32xf32>
    %309 = vector.broadcast %288 : vector<1x32xf32> to vector<16x32xf32>
    %310 = arith.addf %308, %309 : vector<16x32xf32>
    %311 = arith.truncf %310 : vector<16x32xf32> to vector<16x32xbf16>
    %c0_100 = arith.constant 0 : index
    %c0_101 = arith.constant 0 : index
    %312 = vector.load %arg18[%c0_100, %c0_101] : memref<32x128xbf16, #tpu.memory_space<vmem>>, vector<32x128xbf16>
    %cst_102 = arith.constant dense<0.000000e+00> : vector<16x128xf32>
    %313 = tpu.matmul %311, %312, %cst_102 {dimension_numbers = #tpu.dot_dimension_numbers<[1], [0], [0], [1], [0, 0, 1, 1], [], []>} : vector<16x32xbf16>, vector<32x128xbf16>, vector<16x128xf32> -> vector<16x128xf32>
    %c0_103 = arith.constant 0 : index
    %c0_104 = arith.constant 0 : index
    %314 = vector.load %arg19[%c0_103, %c0_104] : memref<1x128xf32, #tpu.memory_space<vmem>>, vector<1x128xf32>
    %315 = vector.broadcast %314 : vector<1x128xf32> to vector<16x128xf32>
    %316 = arith.addf %313, %315 : vector<16x128xf32>
    %cst_105 = arith.constant 0.000000e+00 : f32
    %317 = vector.broadcast %cst_105 : f32 to vector<16x128xf32>
    %318 = arith.maximumf %316, %317 : vector<16x128xf32>
    %319 = arith.truncf %318 : vector<16x128xf32> to vector<16x128xbf16>
    %c0_106 = arith.constant 0 : index
    %c0_107 = arith.constant 0 : index
    %320 = vector.load %arg20[%c0_106, %c0_107] : memref<128x32xbf16, #tpu.memory_space<vmem>>, vector<128x32xbf16>
    %cst_108 = arith.constant dense<0.000000e+00> : vector<16x32xf32>
    %321 = tpu.matmul %319, %320, %cst_108 {dimension_numbers = #tpu.dot_dimension_numbers<[1], [0], [0], [1], [0, 0, 1, 1], [], []>} : vector<16x128xbf16>, vector<128x32xbf16>, vector<16x32xf32> -> vector<16x32xf32>
    %c0_109 = arith.constant 0 : index
    %c0_110 = arith.constant 0 : index
    %322 = vector.load %arg21[%c0_109, %c0_110] : memref<1x32xf32, #tpu.memory_space<vmem>>, vector<1x32xf32>
    %323 = vector.broadcast %322 : vector<1x32xf32> to vector<16x32xf32>
    %324 = arith.addf %321, %323 : vector<16x32xf32>
    %325 = arith.addf %324, %310 : vector<16x32xf32>
    %326 = vector.shape_cast %325 : vector<16x32xf32> to vector<2x8x32xf32>
    %c0_111 = arith.constant 0 : index
    %c0_112 = arith.constant 0 : index
    %c0_113 = arith.constant 0 : index
    %327 = vector.load %arg22[%c0_111, %c0_112, %c0_113] : memref<2x8x32xf32, #tpu.memory_space<vmem>>, vector<2x8x32xf32>
    tpu.vector_store %arg22[%c0_111, %c0_112, %c0_113], %326 {strides = array<i32>} : memref<2x8x32xf32, #tpu.memory_space<vmem>>, vector<2x8x32xf32>,
    return
  }
  func.func @transform_0(%arg0: i32) -> (i32, i32, i32) {
    %c0_i32 = arith.constant 0 : i32
    %c0_i32_0 = arith.constant 0 : i32
    %c0_i32_1 = arith.constant 0 : i32
    return %arg0, %c0_i32, %c0_i32_0 : i32, i32, i32
  }
  func.func @transform_1(%arg0: i32) -> (i32, i32, i32) {
    %c0_i32 = arith.constant 0 : i32
    %c0_i32_0 = arith.constant 0 : i32
    %c0_i32_1 = arith.constant 0 : i32
    return %arg0, %c0_i32, %c0_i32_0 : i32, i32, i32
  }
  func.func @transform_2(%arg0: i32) -> (i32, i32) {
    %c0_i32 = arith.constant 0 : i32
    %c0_i32_0 = arith.constant 0 : i32
    return %arg0, %c0_i32 : i32, i32
  }
  func.func @transform_3(%arg0: i32) -> (i32, i32) {
    %c0_i32 = arith.constant 0 : i32
    %c0_i32_0 = arith.constant 0 : i32
    %c0_i32_1 = arith.constant 0 : i32
    return %c0_i32, %c0_i32_0 : i32, i32
  }
  func.func @transform_4(%arg0: i32) -> (i32, i32) {
    %c0_i32 = arith.constant 0 : i32
    %c0_i32_0 = arith.constant 0 : i32
    %c0_i32_1 = arith.constant 0 : i32
    return %c0_i32, %c0_i32_0 : i32, i32
  }
  func.func @transform_5(%arg0: i32) -> (i32, i32, i32) {
    %c0_i32 = arith.constant 0 : i32
    %c0_i32_0 = arith.constant 0 : i32
    %c0_i32_1 = arith.constant 0 : i32
    %c0_i32_2 = arith.constant 0 : i32
    return %c0_i32, %c0_i32_0, %c0_i32_1 : i32, i32, i32
  }
  func.func @transform_6(%arg0: i32) -> (i32, i32) {
    %c0_i32 = arith.constant 0 : i32
    %c0_i32_0 = arith.constant 0 : i32
    %c0_i32_1 = arith.constant 0 : i32
    return %c0_i32, %c0_i32_0 : i32, i32
  }
  func.func @transform_7(%arg0: i32) -> (i32, i32) {
    %c0_i32 = arith.constant 0 : i32
    %c0_i32_0 = arith.constant 0 : i32
    %c0_i32_1 = arith.constant 0 : i32
    return %c0_i32, %c0_i32_0 : i32, i32
  }
  func.func @transform_8(%arg0: i32) -> (i32, i32) {
    %c0_i32 = arith.constant 0 : i32
    %c0_i32_0 = arith.constant 0 : i32
    %c0_i32_1 = arith.constant 0 : i32
    return %c0_i32, %c0_i32_0 : i32, i32
  }
  func.func @transform_9(%arg0: i32) -> (i32, i32) {
    %c0_i32 = arith.constant 0 : i32
    %c0_i32_0 = arith.constant 0 : i32
    %c0_i32_1 = arith.constant 0 : i32
    return %c0_i32, %c0_i32_0 : i32, i32
  }
  func.func @transform_10(%arg0: i32) -> (i32, i32) {
    %c0_i32 = arith.constant 0 : i32
    %c0_i32_0 = arith.constant 0 : i32
    %c0_i32_1 = arith.constant 0 : i32
    return %c0_i32, %c0_i32_0 : i32, i32
  }
  func.func @transform_11(%arg0: i32) -> (i32, i32) {
    %c0_i32 = arith.constant 0 : i32
    %c0_i32_0 = arith.constant 0 : i32
    %c0_i32_1 = arith.constant 0 : i32
    return %c0_i32, %c0_i32_0 : i32, i32
  }
  func.func @transform_12(%arg0: i32) -> (i32, i32) {
    %c0_i32 = arith.constant 0 : i32
    %c0_i32_0 = arith.constant 0 : i32
    %c0_i32_1 = arith.constant 0 : i32
    return %c0_i32, %c0_i32_0 : i32, i32
  }
  func.func @transform_13(%arg0: i32) -> (i32, i32, i32) {
    %c0_i32 = arith.constant 0 : i32
    %c0_i32_0 = arith.constant 0 : i32
    %c0_i32_1 = arith.constant 0 : i32
    %c0_i32_2 = arith.constant 0 : i32
    return %c0_i32, %c0_i32_0, %c0_i32_1 : i32, i32, i32
  }
  func.func @transform_14(%arg0: i32) -> (i32, i32) {
    %c0_i32 = arith.constant 0 : i32
    %c0_i32_0 = arith.constant 0 : i32
    %c0_i32_1 = arith.constant 0 : i32
    return %c0_i32, %c0_i32_0 : i32, i32
  }
  func.func @transform_15(%arg0: i32) -> (i32, i32) {
    %c0_i32 = arith.constant 0 : i32
    %c0_i32_0 = arith.constant 0 : i32
    %c0_i32_1 = arith.constant 0 : i32
    return %c0_i32, %c0_i32_0 : i32, i32
  }
  func.func @transform_16(%arg0: i32) -> (i32, i32) {
    %c0_i32 = arith.constant 0 : i32
    %c0_i32_0 = arith.constant 0 : i32
    %c0_i32_1 = arith.constant 0 : i32
    return %c0_i32, %c0_i32_0 : i32, i32
  }
  func.func @transform_17(%arg0: i32) -> (i32, i32) {
    %c0_i32 = arith.constant 0 : i32
    %c0_i32_0 = arith.constant 0 : i32
    %c0_i32_1 = arith.constant 0 : i32
    return %c0_i32, %c0_i32_0 : i32, i32
  }
  func.func @transform_18(%arg0: i32) -> (i32, i32) {
    %c0_i32 = arith.constant 0 : i32
    %c0_i32_0 = arith.constant 0 : i32
    %c0_i32_1 = arith.constant 0 : i32
    return %c0_i32, %c0_i32_0 : i32, i32
  }
  func.func @transform_19(%arg0: i32) -> (i32, i32) {
    %c0_i32 = arith.constant 0 : i32
    %c0_i32_0 = arith.constant 0 : i32
    %c0_i32_1 = arith.constant 0 : i32
    return %c0_i32, %c0_i32_0 : i32, i32
  }
  func.func @transform_20(%arg0: i32) -> (i32, i32) {
    %c0_i32 = arith.constant 0 : i32
    %c0_i32_0 = arith.constant 0 : i32
    %c0_i32_1 = arith.constant 0 : i32
    return %c0_i32, %c0_i32_0 : i32, i32
  }
  func.func @transform_21(%arg0: i32) -> (i32, i32, i32) {
    %c0_i32 = arith.constant 0 : i32
    %c0_i32_0 = arith.constant 0 : i32
    %c0_i32_1 = arith.constant 0 : i32
    return %arg0, %c0_i32, %c0_i32_0 : i32, i32, i32
  }
}

</mosaic_0001>

<bundles_post_ra>
// kernel: tpu_custom_call.1
= control target key start
LH: loop header
LB: loop body
LE: loop exit
PB: predicated region body
PF: predicated region fallthrough
CT: control target
= control target key end

     0   :  { %s4601_s0 = inlined_call_operand.vmem [shape: f32[2,8,32], index: 0, kind: input, shape index: {}]   ;;  %s4602_s1 = inlined_call_operand.vmem [shape: f32[2,8,32], index: 1, kind: input, shape index: {}]   ;;  %s4603_s2 = inlined_call_operand.hbm [shape: f32[2,8], index: 2, kind: input, shape index: {}]   ;;  %s4604_s3 = inlined_call_operand.vmem [shape: bf16[32,96], index: 3, kind: input, shape index: {}]   ;;  %s4605_s4 = inlined_call_operand.hbm [shape: f32[1,96], index: 4, kind: input, shape index: {}]   ;;  %s4606_s5 = inlined_call_operand.vmem [shape: bf16[4,8,32], index: 5, kind: input, shape index: {}]   ;;  %s4607_s6 = inlined_call_operand.hbm [shape: f32[1,32], index: 6, kind: input, shape index: {}]   ;;  %s4608_s7 = inlined_call_operand.hbm [shape: f32[1,32], index: 7, kind: input, shape index: {}]   ;;  %s4609_s8 = inlined_call_operand.hbm [shape: f32[1,32], index: 8, kind: input, shape index: {}]   ;;  %s4610_s9 = inlined_call_operand.vmem [shape: bf16[32,32], index: 9, kind: input, shape index: {}]   ;;  %s4611_s10 = inlined_call_operand.hbm [shape: f32[1,32], index: 10, kind: input, shape index: {}]   ;;  %s4612_s11 = inlined_call_operand.vmem [shape: bf16[32,64], index: 11, kind: input, shape index: {}]   ;;  %s4613_s12 = inlined_call_operand.hbm [shape: f32[1,64], index: 12, kind: input, shape index: {}]   ;;  %s4614_s13 = inlined_call_operand.vmem [shape: bf16[4,8,32], index: 13, kind: input, shape index: {}]   ;;  %s4615_s14 = inlined_call_operand.hbm [shape: f32[1,32], index: 14, kind: input, shape index: {}]   ;;  %s4616_s15 = inlined_call_operand.hbm [shape: f32[1,32], index: 15, kind: input, shape index: {}]   ;;  %s4617_s16 = inlined_call_operand.hbm [shape: f32[1,32], index: 16, kind: input, shape index: {}]   ;;  %s4618_s17 = inlined_call_operand.vmem [shape: bf16[32,128], index: 17, kind: input, shape index: {}]   ;;  %s4619_s18 = inlined_call_operand.vmem [shape: f32[1,128], index: 18, kind: input, shape index: {}]   ;;  %s4620_s19 = inlined_call_operand.vmem [shape: bf16[128,32], index: 19, kind: input, shape index: {}]   ;;  %s4621_s20 = inlined_call_operand.vmem [shape: f32[1,32], index: 20, kind: input, shape index: {}]   ;;  %s4622_s21 = inlined_call_operand.hbm [shape: f32[2,8,32], index: 21, kind: output, shape index: {}]  }
   0x1   :  { %4629 = sst [smem:[#allocation27_spill]] %s4601_s0 }
   0x2   :  { %4630 = sst [smem:[#allocation28_spill]] %s4602_s1 }
   0x3   :  { %4631 = sst [smem:[#allocation29_spill]] %s4603_s2 }
   0x4   :  { %4632 = sst [smem:[#allocation30_spill]] %s4604_s3 }
   0x5   :  { %4633 = sst [smem:[#allocation31_spill]] %s4605_s4 }
   0x6   :  { %4634 = sst [smem:[#allocation32_spill]] %s4606_s5 }
   0x7   :  { %26 = vsyncpa [#allocation3], 0 }
   0x8   :  { %27 = vsyncpa [#allocation6], 0 }
   0x9   :  { %28 = vsyncpa [#allocation9], 0 }
   0xa   :  { %29 = vsyncpa [#allocation12], 0 }
   0xb   :  { %30 = vsyncpa [#allocation15], 0 }
   0xc   :  { %31 = vsyncpa [#allocation18], 0 }
   0xd   :  { %32 = vsyncpa [#allocation4], 0  ;;  %s3777_s2 = smov [#allocation5]   ;;  %s3778_s26 = smov [#allocation8]  }
   0xe   :  { %s55_s25 = sshll.u32 %s3777_s2, 4  ;;  %s77_s27 = sshll.u32 %s3778_s26, 4  ;;  %s56_s25 = int_to_ptr.vmem [resolvable:$true] %s55_s25  ;;  %s78_s27 = int_to_ptr.vmem [resolvable:$true] %s77_s27 }
   0xf   :  { %s4635_s29 = sld [smem:[#allocation31_spill]] }
  0x15   :  { %s3521_s0 = scalar_lea.hbm %s4635_s29, 16 }
  0x16   :  { %p3522_p0 = scmp.ne.s32.totalorder %s4635_s29, %s3521_s0  ;;  %p3525_p1 = scmp.lt.u32.totalorder %s3521_s0, %s4635_s29 }
  0x18   :  { %p3527_p2 = pnand %p3525_p1, %p3522_p0 }
  0x1a   :  { %3530 = shalt.err (!%p3527_p2)
}
  0x1b   :  { %s3531_s23 = scalar_lea.vmem %s56_s25, 16  ;;  %s3535_s1 = scalar_lea.vmem %s56_s25, 32 }
  0x1c   :  { %p3532_p3 = scmp.ne.s32.totalorder %s56_s25, %s3531_s23  ;;  %p3536_p4 = scmp.lt.s32.totalorder %s56_s25, %s56_s25 }
  0x1d   :  { %p3537_p5 = scmp.lt.s32.totalorder %s3535_s1, %s3531_s23 }
  0x1f   :  { %p3538_p6 = por %p3537_p5, %p3536_p4 }
  0x21   :  { %p3539_p7 = pnand %p3538_p6, %p3532_p3 }
  0x23   :  { %3542 = shalt.err (!%p3539_p7)
}
  0x24   :  { %58 = dma.hbm_to_vmem [thread:$0]  %s4635_s29, 16, %s56_s25, [#allocation6]  }
  0x25   :  { %s3543_s28 = scalar_lea.hbm %s4608_s7, 16 }
  0x26   :  { %p3544_p8 = scmp.ne.s32.totalorder %s4608_s7, %s3543_s28  ;;  %p3547_p9 = scmp.lt.u32.totalorder %s3543_s28, %s4608_s7 }
  0x28   :  { %p3549_p10 = pnand %p3547_p9, %p3544_p8 }
  0x2a   :  { %3552 = shalt.err (!%p3549_p10)
}
  0x2b   :  { %s3553_s22 = scalar_lea.vmem %s78_s27, 16  ;;  %s3557_s23 = scalar_lea.vmem %s78_s27, 32 }
  0x2c   :  { %p3554_p11 = scmp.ne.s32.totalorder %s78_s27, %s3553_s22  ;;  %p3558_p12 = scmp.lt.s32.totalorder %s78_s27, %s78_s27 }
  0x2d   :  { %p3559_p13 = scmp.lt.s32.totalorder %s3557_s23, %s3553_s22 }
  0x2f   :  { %p3560_p0 = por %p3559_p13, %p3558_p12 }
  0x31   :  { %p3561_p1 = pnand %p3560_p0, %p3554_p11 }
  0x33   :  { %3564 = shalt.err (!%p3561_p1)
}
  0x34   :  { %80 = dma.hbm_to_vmem [thread:$0]  %s4608_s7, 16, %s78_s27, [#allocation9]  }
  0x35   :  { %s3779_s1 = smov [#allocation11]   ;;  %s3780_s2 = smov [#allocation14]  }
  0x36   :  { %s99_s24 = sshll.u32 %s3779_s1, 4  ;;  %s123_s26 = sshll.u32 %s3780_s2, 4  ;;  %s100_s24 = int_to_ptr.vmem [resolvable:$true] %s99_s24  ;;  %s124_s26 = int_to_ptr.vmem [resolvable:$true] %s123_s26 }
  0x37   :  { %s3565_s4 = scalar_lea.hbm %s4611_s10, 16 }
  0x38   :  { %p3566_p2 = scmp.ne.s32.totalorder %s4611_s10, %s3565_s4  ;;  %p3569_p3 = scmp.lt.u32.totalorder %s3565_s4, %s4611_s10 }
  0x3a   :  { %p3571_p4 = pnand %p3569_p3, %p3566_p2 }
  0x3c   :  { %3574 = shalt.err (!%p3571_p4)
}
  0x3d   :  { %s3575_s7 = scalar_lea.vmem %s100_s24, 16  ;;  %s3579_s27 = scalar_lea.vmem %s100_s24, 32 }
  0x3e   :  { %p3576_p5 = scmp.ne.s32.totalorder %s100_s24, %s3575_s7  ;;  %p3580_p6 = scmp.lt.s32.totalorder %s100_s24, %s100_s24 }
  0x3f   :  { %p3581_p7 = scmp.lt.s32.totalorder %s3579_s27, %s3575_s7 }
  0x41   :  { %p3582_p8 = por %p3581_p7, %p3580_p6 }
  0x43   :  { %p3583_p9 = pnand %p3582_p8, %p3576_p5 }
  0x45   :  { %3586 = shalt.err (!%p3583_p9)
}
  0x46   :  { %102 = dma.hbm_to_vmem [thread:$0]  %s4611_s10, 16, %s100_s24, [#allocation12]  }
  0x47   :  { %s3587_s2 = scalar_lea.hbm %s4615_s14, 16 }
  0x48   :  { %p3588_p10 = scmp.ne.s32.totalorder %s4615_s14, %s3587_s2  ;;  %p3591_p11 = scmp.lt.u32.totalorder %s3587_s2, %s4615_s14 }
  0x4a   :  { %p3593_p12 = pnand %p3591_p11, %p3588_p10 }
  0x4c   :  { %3596 = shalt.err (!%p3593_p12)
}
  0x4d   :  { %s3597_s30 = scalar_lea.vmem %s124_s26, 16  ;;  %s3601_s5 = scalar_lea.vmem %s124_s26, 32 }
  0x4e   :  { %p3598_p13 = scmp.ne.s32.totalorder %s124_s26, %s3597_s30  ;;  %p3602_p0 = scmp.lt.s32.totalorder %s124_s26, %s124_s26 }
  0x4f   :  { %p3603_p1 = scmp.lt.s32.totalorder %s3601_s5, %s3597_s30 }
  0x51   :  { %p3604_p2 = por %p3603_p1, %p3602_p0 }
  0x53   :  { %p3605_p3 = pnand %p3604_p2, %p3598_p13 }
  0x55   :  { %3608 = shalt.err (!%p3605_p3)
}
  0x56   :  { %126 = dma.hbm_to_vmem [thread:$0]  %s4615_s14, 16, %s124_s26, [#allocation15]  }
  0x57   :  { %s3781_s22 = smov [#allocation2]   ;;  %s3782_s27 = smov [#allocation7]  }
  0x58   :  { %s43_s7 = sshll.u32 %s3781_s22, 4  ;;  %s67_s23 = sshll.u32 %s3782_s27, 4  ;;  %s44_s7 = int_to_ptr.vmem [resolvable:$true] %s43_s7  ;;  %s68_s23 = int_to_ptr.vmem [resolvable:$true] %s67_s23 }
  0x59   :  { %s4636_s1 = sld [smem:[#allocation29_spill]] }
  0x5f   :  { %s3609_s2 = scalar_lea.hbm %s4636_s1, 32 }
  0x60   :  { %p3610_p4 = scmp.ne.s32.totalorder %s4636_s1, %s3609_s2  ;;  %p3613_p5 = scmp.lt.u32.totalorder %s3609_s2, %s4636_s1 }
  0x62   :  { %p3615_p6 = pnand %p3613_p5, %p3610_p4 }
  0x64   :  { %3618 = shalt.err (!%p3615_p6)
}
  0x65   :  { %s3619_s14 = scalar_lea.vmem %s44_s7, 32  ;;  %p3624_p8 = scmp.lt.s32.totalorder %s44_s7, %s44_s7 }
  0x66   :  { %p3620_p7 = scmp.ne.s32.totalorder %s44_s7, %s3619_s14  ;;  %p3625_p9 = scmp.lt.s32.totalorder %s3619_s14, %s3619_s14 }
  0x68   :  { %p3626_p10 = por %p3625_p9, %p3624_p8 }
  0x6a   :  { %p3627_p11 = pnand %p3626_p10, %p3620_p7 }
  0x6c   :  { %3630 = shalt.err (!%p3627_p11)
}
  0x6d   :  { %46 = dma.hbm_to_vmem [thread:$0]  %s4636_s1, 32, %s44_s7, [#allocation3]  }
  0x6e   :  { %s3631_s24 = scalar_lea.hbm %s4607_s6, 16 }
  0x6f   :  { %p3632_p12 = scmp.ne.s32.totalorder %s4607_s6, %s3631_s24  ;;  %p3635_p13 = scmp.lt.u32.totalorder %s3631_s24, %s4607_s6 }
  0x71   :  { %p3637_p0 = pnand %p3635_p13, %p3632_p12 }
  0x73   :  { %3640 = shalt.err (!%p3637_p0)
}
  0x74   :  { %s3641_s2 = scalar_lea.vmem %s68_s23, 16  ;;  %s3645_s3 = scalar_lea.vmem %s68_s23, 32 }
  0x75   :  { %p3642_p1 = scmp.ne.s32.totalorder %s68_s23, %s3641_s2  ;;  %p3646_p2 = scmp.lt.s32.totalorder %s68_s23, %s68_s23 }
  0x76   :  { %p3647_p3 = scmp.lt.s32.totalorder %s3645_s3, %s3641_s2 }
  0x78   :  { %p3648_p4 = por %p3647_p3, %p3646_p2 }
  0x7a   :  { %p3649_p5 = pnand %p3648_p4, %p3642_p1 }
  0x7c   :  { %3652 = shalt.err (!%p3649_p5)
}
  0x7d   :  { %70 = dma.hbm_to_vmem [thread:$0]  %s4607_s6, 16, %s68_s23, [#allocation6]  }
  0x7e   :  { %s3783_s28 = smov [#allocation10]   ;;  %s3784_s0 = smov [#allocation13]  }
  0x7f   :  { %s87_s4 = sshll.u32 %s3783_s28, 4  ;;  %s111_s14 = sshll.u32 %s3784_s0, 4  ;;  %s88_s4 = int_to_ptr.vmem [resolvable:$true] %s87_s4  ;;  %s112_s14 = int_to_ptr.vmem [resolvable:$true] %s111_s14 }
  0x80   :  { %s3653_s5 = scalar_lea.hbm %s4609_s8, 16 }
  0x81   :  { %p3654_p6 = scmp.ne.s32.totalorder %s4609_s8, %s3653_s5  ;;  %p3657_p7 = scmp.lt.u32.totalorder %s3653_s5, %s4609_s8 }
  0x83   :  { %p3659_p8 = pnand %p3657_p7, %p3654_p6 }
  0x85   :  { %3662 = shalt.err (!%p3659_p8)
}
  0x86   :  { %s3663_s6 = scalar_lea.vmem %s88_s4, 16  ;;  %s3667_s23 = scalar_lea.vmem %s88_s4, 32 }
  0x87   :  { %p3664_p9 = scmp.ne.s32.totalorder %s88_s4, %s3663_s6  ;;  %p3668_p10 = scmp.lt.s32.totalorder %s88_s4, %s88_s4 }
  0x88   :  { %p3669_p11 = scmp.lt.s32.totalorder %s3667_s23, %s3663_s6 }
  0x8a   :  { %p3670_p12 = por %p3669_p11, %p3668_p10 }
  0x8c   :  { %p3671_p13 = pnand %p3670_p12, %p3664_p9 }
  0x8e   :  { %3674 = shalt.err (!%p3671_p13)
}
  0x8f   :  { %90 = dma.hbm_to_vmem [thread:$0]  %s4609_s8, 16, %s88_s4, [#allocation9]  }
  0x90   :  { %s3675_s7 = scalar_lea.hbm %s4613_s12, 16 }
  0x91   :  { %p3676_p0 = scmp.ne.s32.totalorder %s4613_s12, %s3675_s7  ;;  %p3679_p1 = scmp.lt.u32.totalorder %s3675_s7, %s4613_s12 }
  0x93   :  { %p3681_p2 = pnand %p3679_p1, %p3676_p0 }
  0x95   :  { %3684 = shalt.err (!%p3681_p2)
}
  0x96   :  { %s3685_s30 = scalar_lea.vmem %s112_s14, 16  ;;  %s3689_s5 = scalar_lea.vmem %s112_s14, 32 }
  0x97   :  { %p3686_p3 = scmp.ne.s32.totalorder %s112_s14, %s3685_s30  ;;  %p3690_p4 = scmp.lt.s32.totalorder %s112_s14, %s112_s14 }
  0x98   :  { %p3691_p5 = scmp.lt.s32.totalorder %s3689_s5, %s3685_s30 }
  0x9a   :  { %p3692_p6 = por %p3691_p5, %p3690_p4 }
  0x9c   :  { %p3693_p7 = pnand %p3692_p6, %p3686_p3 }
  0x9e   :  { %3696 = shalt.err (!%p3693_p7)
}
  0x9f   :  { %114 = dma.hbm_to_vmem [thread:$0]  %s4613_s12, 16, %s112_s14, [#allocation12]  }
  0xa0   :  { %s3785_s10 = smov [#allocation16]   ;;  %s3786_s22 = smov [#allocation17]  }
  0xa1   :  { %s133_s24 = sshll.u32 %s3785_s10, 4  ;;  %s143_s27 = sshll.u32 %s3786_s22, 4  ;;  %s134_s24 = int_to_ptr.vmem [resolvable:$true] %s133_s24  ;;  %s144_s27 = int_to_ptr.vmem [resolvable:$true] %s143_s27 }
  0xa2   :  { %s3697_s25 = scalar_lea.hbm %s4616_s15, 16 }
  0xa3   :  { %p3698_p8 = scmp.ne.s32.totalorder %s4616_s15, %s3697_s25  ;;  %p3701_p9 = scmp.lt.u32.totalorder %s3697_s25, %s4616_s15 }
  0xa5   :  { %p3703_p10 = pnand %p3701_p9, %p3698_p8 }
  0xa7   :  { %3706 = shalt.err (!%p3703_p10)
}
  0xa8   :  { %s3707_s12 = scalar_lea.vmem %s134_s24, 16  ;;  %s3711_s14 = scalar_lea.vmem %s134_s24, 32 }
  0xa9   :  { %p3708_p11 = scmp.ne.s32.totalorder %s134_s24, %s3707_s12  ;;  %p3712_p12 = scmp.lt.s32.totalorder %s134_s24, %s134_s24 }
  0xaa   :  { %p3713_p13 = scmp.lt.s32.totalorder %s3711_s14, %s3707_s12 }
  0xac   :  { %p3714_p0 = por %p3713_p13, %p3712_p12 }
  0xae   :  { %p3715_p1 = pnand %p3714_p0, %p3708_p11 }
  0xb0   :  { %3718 = shalt.err (!%p3715_p1)
}
  0xb1   :  { %136 = dma.hbm_to_vmem [thread:$0]  %s4616_s15, 16, %s134_s24, [#allocation15]  }
  0xb2   :  { %s3719_s30 = scalar_lea.hbm %s4617_s16, 16 }
  0xb3   :  { %p3720_p2 = scmp.ne.s32.totalorder %s4617_s16, %s3719_s30  ;;  %p3723_p3 = scmp.lt.u32.totalorder %s3719_s30, %s4617_s16 }
  0xb5   :  { %p3725_p4 = pnand %p3723_p3, %p3720_p2 }
  0xb7   :  { %3728 = shalt.err (!%p3725_p4)
}
  0xb8   :  { %s3729_s22 = scalar_lea.vmem %s144_s27, 16  ;;  %s3733_s6 = scalar_lea.vmem %s144_s27, 32 }
  0xb9   :  { %p3730_p5 = scmp.ne.s32.totalorder %s144_s27, %s3729_s22  ;;  %p3734_p6 = scmp.lt.s32.totalorder %s144_s27, %s144_s27 }
  0xba   :  { %p3735_p7 = scmp.lt.s32.totalorder %s3733_s6, %s3729_s22 }
  0xbc   :  { %p3736_p8 = por %p3735_p7, %p3734_p6 }
  0xbe   :  { %p3737_p9 = pnand %p3736_p8, %p3730_p5 }
  0xc0   :  { %3740 = shalt.err (!%p3737_p9)
}
  0xc1   :  { %146 = dma.hbm_to_vmem [thread:$0]  %s4617_s16, 16, %s144_s27, [#allocation18]  }
  0xc2   :  { %3763 = dma.done.wait [#allocation3], 32  }
  0xc3   :  { %3764 = vsyncadd [#allocation3], 4294967264 }
  0xc4   :  { %3765 = dma.done.wait [#allocation6], 32  }
  0xc5   :  { %3766 = vsyncadd [#allocation6], 4294967264 }
  0xc6   :  { %3767 = dma.done.wait [#allocation9], 32  }
  0xc7   :  { %3768 = vsyncadd [#allocation9], 4294967264 }
  0xc8   :  { %3769 = dma.done.wait [#allocation12], 32  }
  0xc9   :  { %3770 = vsyncadd [#allocation12], 4294967264 }
  0xca   :  { %3771 = dma.done.wait [#allocation15], 32  }
  0xcb   :  { %3772 = vsyncadd [#allocation15], 4294967264 }
  0xcc   :  { %3773 = dma.done.wait [#allocation18], 16  }
  0xcd   :  { %3774 = vsyncadd [#allocation18], 4294967280  ;;  %v3787_v0 = vmov 0.0   ;;  %vm3788_vm0 = vmmov 0   ;;  %s4637_s23 = sld [smem:[#allocation30_spill]]  ;;  %s4638_s7 = sld [smem:[#allocation27_spill]]  ;;  %v192_v19 = vlaneseq }
  0xce   :  { %3113 = vmatprep.subr.bf16.mxu1 %v3787_v0  ;;  %3117 = vmatprep.mubr.msk.bf16.mxu1 %vm3788_vm0, %v3787_v0  ;;  %vm262_vm1 = vcmask 261120   ;;  %v2941_v6 = vld [vmem:[#allocation5] ss:$0 sm:$0xff]  ;;  %s3789_s1 = smov 96   ;;  %vm317_vm2 = vcmask 64512   ;;  %v3791_v26 = vmov 0  }
  0xcf   :  { %3139 = vmatprep.subr.bf16.mxu0 %v3787_v0  ;;  %3141 = vmatprep.mubr.msk.bf16.mxu0 %vm3788_vm0, %v3787_v0  ;;  %v3790_v20 = vmov 1966171168   ;;  %v190_v22 = vld [vmem:[#allocation2] sm:$0x3]  ;;  %v193_v23 = vshrl.u32 %v192_v19, 7  ;;  %v195_v34 = vand.u32 127, %v192_v19 }
  0xd0   :  { %v199_v21 = vunpack.c.l.s4 %v3790_v20  ;;  %vm191_vm3 = vcmp.gt.f32.partialorder %v190_v22, 0.5  ;;  %s3792_s28 = smov 64   ;;  %s3793_s0 = smov 88   ;;  %vm444_vm11 = vcmask 1043456  }
  0xd1   :  { %v197_v27 = vsel %vm191_vm3, 1, %v3791_v26  ;;  %v228_v31 = vsub.s32 0, %v193_v23  ;;  %vm196_vm6 = vcmp.ge.s32.totalorder %v193_v23, %v195_v34  ;;  %s3794_s26 = smov 120   ;;  %s3795_s30 = smov 56  }
  0xd2   :  { %v200_v24 = vunpack.c.0.s8 %v199_v21  ;;  %s3796_s5 = smov 112   ;;  %s3797_s8 = smov 80  }
  0xd3   :  { %v3433_v1 = vld [vmem:[%s4637_s23] sm:$0xff]   ;;  %v3434_v2 = vld [vmem:[%s4637_s23 + $0x8] sm:$0xff]   ;;  %s4643_s22 = sld [smem:[#allocation32_spill]]  ;;  %s3798_s24 = smov 48  }
  0xd4   :  { %3114 = vmatpush3.bf16.msra.mxu1 %v3433_v1  ;;  %v4050_v3 = vld [vmem:[%s4638_s7] sm:$0xff]  ;;  %v4055_v4 = vld [vmem:[%s4638_s7 + $0x8] sm:$0xff]  ;;  %v203_v25 = vsub.s32 %v200_v24, %v193_v23  ;;  %s3799_s16 = smov 72   ;;  %s3800_s27 = smov 104  }
  0xd5   :  { %3115 = vmatprep.subr.bf16.mxu1 %v3787_v0  ;;  %v238_v5 = vpack.c.bf16 %v4055_v4, %v4050_v3  ;;  %s3801_s29 = smov 40   ;;  %s4644_s10 = sld [smem:[#allocation28_spill]] }
  0xd6   :  { %v204_v28 = vrot.slane %v197_v27, %v203_v25 }
  0xd8   :  { %3116 = vmatpush3.bf16.msra.mxu1 %v3434_v2  ;;  %v212_v29 = vrot.slane %v204_v28, %v203_v25  ;;  %v205_v30 = vcombine.high %v204_v28, %v204_v28 }
  0xd9   :  { %3121 = vmatprep.subr.bf16.mxu1 %v3787_v0 }
  0xda   :  { %vm220_vm4 = vcmp.ne.s32.totalorder %v212_v29, 0  ;;  %v219_v33 = vrot.slane %v205_v30, %v203_v25 }
  0xdb   :  { %3118 = vmatmul.mubr.msk.bf16.vlgmr.msra.gmra.mrb[0].mxu1 %vm262_vm1, %v238_v5  ;;  %v224_v32 = vsel %vm220_vm4, 1, %v3791_v26 }
  0xdc   :  { %3123 = vmatprep.mubr.msk.bf16.mxu1 %vm3788_vm0, %v3787_v0  ;;  %v4084_v35 = vrot.slane %v224_v32, %v228_v31  ;;  %vm221_vm5 = vcmp.ne.s32.totalorder %v219_v33, 0 }
  0xdd   :  { %v225_v36 = vsel %vm221_vm5, 1, %v3791_v26 }
  0xde   :  { %vm234_vm7 = vcmp.eq.s32.totalorder %v4084_v35, 1  ;;  %v4093_v38 = vrot.slane %v225_v36, %v228_v31 }
  0xdf   :  { %vm4089_vm8 = vmand %vm196_vm6, %vm234_vm7 }
  0xe0   :  { %vm235_vm9 = vcmp.eq.s32.totalorder %v4093_v38, 1 }
  0xe1   :  { %vm4101_vm10 = vmand %vm196_vm6, %vm235_vm9 }
 0x1ae   :  { %v300_v7 = vpop.f32.mrb[0].mxu1 }
 0x1af   :  { %v301_v8 = vadd.f32 %v2941_v6, %v300_v7  ;;  %v3119_v9 = vpop.f32.mrb[1].mxu1 }
 0x1b0   :  { %v303_v10 = vpop.f32.mrb[2].mxu1 }
 0x1b1   :  { %v4064_v11 = vpack.c.bf16 %v301_v8, %v301_v8  ;;  %v304_v12 = vadd.f32 %v2941_v6, %v303_v10  ;;  %v3120_v13 = vpop.f32.mrb[3].mxu1 }
 0x1b3   :  { %315 = vrot.lane.b32.xlu0 %v4064_v11, %s3789_s1  ;;  %v4068_v14 = vpack.c.bf16 %v304_v12, %v304_v12 }
 0x1b7   :  { %365 = vrot.lane.b32.xlu0 %v4068_v14, %s3789_s1 }
 0x225   :  { %v316_v15 = vpop.permute.xlu0 %315 }
 0x226   :  { %v322_v16 = vsel %vm317_vm2, %v316_v15, 0 }
 0x227   :  { %3122 = vmatpush3.bf16.xpose.msra.mxu1 %v322_v16 }
 0x228   :  { %3127 = vmatprep.subr.bf16.mxu1 %v3787_v0 }
 0x229   :  { %v366_v17 = vpop.permute.xlu0 %365 }
 0x22a   :  { %v371_v18 = vsel %vm317_vm2, %v366_v17, 0 }
 0x22e   :  { %3124 = vmatmul.mubr.msk.bf16.vlgmr.msra.gmra.mrb[4].mxu1 %vm317_vm2, %v4064_v11 }
 0x22f   :  { %3128 = vmatpush3.bf16.xpose.msra.mxu1 %v371_v18  ;;  %3129 = vmatprep.mubr.msk.bf16.mxu1 %vm3788_vm0, %v3787_v0 }
 0x230   :  { %3133 = vmatprep.subr.bf16.mxu1 %v3787_v0 }
 0x236   :  { %3130 = vmatmul.mubr.msk.bf16.vlgmr.msra.gmra.mrb[8].mxu1 %vm317_vm2, %v4068_v14 }
 0x237   :  { %3135 = vmatprep.mubr.msk.bf16.mxu1 %vm3788_vm0, %v3787_v0 }
 0x301   :  { %v358_v39 = vpop.f32.mrb[4].mxu1 }
 0x302   :  { %v413_v40 = vsel %vm4089_vm8, %v358_v39, -1e+30  ;;  %v3125_v41 = vpop.f32.mrb[5].mxu1 }
 0x303   :  { %v361_v42 = vpop.f32.mrb[6].mxu1  ;;  %v415_v43 = vsel %vm317_vm2, %v413_v40, -inf }
 0x304   :  { %416 = vmax.xlane.f32.xlu1 %v415_v43  ;;  %v3126_v44 = vpop.f32.mrb[7].mxu1 }
 0x309   :  { %v407_v46 = vpop.f32.mrb[8].mxu1 }
 0x30a   :  { %v414_v47 = vsel %vm4101_vm10, %v407_v46, -1e+30  ;;  %v3131_v48 = vpop.f32.mrb[9].mxu1 }
 0x30b   :  { %v410_v49 = vpop.f32.mrb[10].mxu1  ;;  %v418_v50 = vsel %vm317_vm2, %v414_v47, -inf }
 0x30c   :  { %419 = vmax.xlane.f32.xlu1 %v418_v50  ;;  %v3132_v51 = vpop.f32.mrb[11].mxu1 }
 0x31d   :  { %439 = vrot.lane.b32.xlu1 %v4064_v11, %s3792_s28 }
 0x321   :  { %488 = vrot.lane.b32.xlu1 %v4068_v14, %s3792_s28 }
 0x325   :  { %539 = vrot.lane.b32.xlu1 %v4064_v11, %s3793_s0 }
 0x391   :  { %v417_v52 = vpop.xlane.xlu1 %416 }
 0x392   :  { %v421_v53 = vsub.f32 %v413_v40, %v417_v52 }
 0x394   :  { %v423_v54 = vmul.f32 1.442695, %v421_v53 }
 0x396   :  { %3449 = vpow2.f32 %v423_v54 }
 0x399   :  { %v420_v55 = vpop.xlane.xlu1 %419 }
 0x39a   :  { %v422_v56 = vsub.f32 %v414_v47, %v420_v55 }
 0x39c   :  { %v425_v57 = vmul.f32 1.442695, %v422_v56 }
 0x39d   :  { %v440_v58 = vpop.permute.xlu1 %439 }
 0x39e   :  { %3451 = vpow2.f32 %v425_v57  ;;  %v446_v59 = vsel %vm444_vm11, %v440_v58, 0 }
 0x39f   :  { %3134 = vmatpush3.bf16.msra.mxu1 %v446_v59 }
 0x3a0   :  { %v3450_v60 = vpop.eup %3449  ;;  %3145 = vmatprep.subr.bf16.mxu1 %v3787_v0 }
 0x3a1   :  { %v489_v61 = vpop.permute.xlu1 %488  ;;  %v427_v62 = vsel %vm317_vm2, %v3450_v60, 0.0 }
 0x3a2   :  { %428 = vadd.xlane.f32.xlu0 %v427_v62  ;;  %v494_v63 = vsel %vm444_vm11, %v489_v61, 0 }
 0x3a3   :  { %3140 = vmatpush3.bf16.msra.mxu0 %v494_v63 }
 0x3a4   :  { %3151 = vmatprep.subr.bf16.mxu0 %v3787_v0 }
 0x3a5   :  { %v540_v6 = vpop.permute.xlu1 %539 }
 0x3a6   :  { %v545_v12 = vsel %vm317_vm2, %v540_v6, 0 }
 0x3a8   :  { %v3452_v1 = vpop.eup %3451 }
 0x3a9   :  { %v430_v2 = vsel %vm317_vm2, %v3452_v1, 0.0 }
 0x3aa   :  { %431 = vadd.xlane.f32.xlu1 %v430_v2 }
 0x3b8   :  { %537 = vrot.lane.b32.xlu0 %v4064_v11, %s3794_s26 }
 0x3bb   :  { %589 = vrot.lane.b32.xlu1 %v4068_v14, %s3793_s0 }
 0x3bf   :  { %587 = vrot.lane.b32.xlu1 %v4068_v14, %s3794_s26 }
 0x42f   :  { %v429_v5 = vpop.xlane.xlu0 %428 }
 0x430   :  { %3453 = vrcp.f32 %v429_v5  ;;  %v307_v5 = vld [vmem:[%s4643_s22] sm:$0xf] }
 0x433   :  { %v538_v18 = vpop.permute.xlu0 %537 }
 0x437   :  { %v432_v7 = vpop.xlane.xlu1 %431 }
 0x438   :  { %3455 = vrcp.f32 %v432_v7 }
 0x43a   :  { %v3454_v8 = vpop.eup %3453 }
 0x43b   :  { %v435_v9 = vmul.f32 %v3454_v8, %v3450_v60  ;;  %v590_v16 = vpop.permute.xlu1 %589  ;;  %v811_v8 = vsel %vm444_vm11, %v307_v5, 0 }
 0x43c   :  { %v595_v19 = vsel %vm317_vm2, %v590_v16, 0 }
 0x43d   :  { %v437_v10 = vpack.c.bf16 %v435_v9, %v435_v9 }
 0x43f   :  { %3136 = vmatmul.mubr.msk.bf16.vlgmr.msra.gmra.mrb[12].mxu1 %vm317_vm2, %v437_v10  ;;  %v588_v20 = vpop.permute.xlu1 %587 }
 0x440   :  { %3146 = vmatpush3.bf16.xpose.msra.mxu1 %v545_v12  ;;  %3147 = vmatprep.mubr.msk.bf16.mxu1 %vm3788_vm0, %v3787_v0 }
 0x441   :  { %3157 = vmatprep.subr.bf16.mxu1 %v3787_v0 }
 0x442   :  { %v3456_v13 = vpop.eup %3455 }
 0x443   :  { %v436_v15 = vmul.f32 %v3456_v13, %v3452_v1 }
 0x445   :  { %v438_v17 = vpack.c.bf16 %v436_v15, %v436_v15  ;;  %v308_v15 = vld [vmem:[%s4643_s22 + $0x4] sm:$0xf] }
 0x446   :  { %v764_v16 = vsel %vm444_vm11, %v308_v15, 0 }
 0x447   :  { %3142 = vmatmul.mubr.msk.bf16.vlgmr.msra.gmra.mrb[0].mxu0 %vm317_vm2, %v438_v17  ;;  %3148 = vmatmul.mubr.msk.bf16.vlgmr.msra.gmra.mrb[16].mxu1 %vm317_vm2, %v538_v18 }
 0x448   :  { %3152 = vmatpush3.bf16.xpose.msra.mxu0 %v595_v19  ;;  %3153 = vmatprep.mubr.msk.bf16.mxu0 %vm3788_vm0, %v3787_v0 }
 0x449   :  { %3163 = vmatprep.subr.bf16.mxu0 %v3787_v0  ;;  %3159 = vmatprep.mubr.msk.bf16.mxu1 %vm3788_vm0, %v3787_v0 }
 0x44f   :  { %3154 = vmatmul.mubr.msk.bf16.vlgmr.msra.gmra.mrb[4].mxu0 %vm317_vm2, %v588_v20 }
 0x450   :  { %3165 = vmatprep.mubr.msk.bf16.mxu0 %vm3788_vm0, %v3787_v0 }
 0x512   :  { %v4140_v21 = vpop.f32.mrb[12].mxu1 }
 0x513   :  { %v3137_v22 = vpop.f32.mrb[13].mxu1 }
 0x514   :  { %v485_v23 = vpop.f32.mrb[14].mxu1 }
 0x515   :  { %v3138_v24 = vpop.f32.mrb[15].mxu1 }
 0x51a   :  { %v4142_v25 = vpop.f32.mrb[0].mxu0  ;;  %v581_v26 = vpop.f32.mrb[16].mxu1 }
 0x51b   :  { %v536_v27 = vpack.c.bf16 %v4142_v25, %v4140_v21  ;;  %v637_v28 = vsel %vm4089_vm8, %v581_v26, -1e+30  ;;  %v3143_v29 = vpop.f32.mrb[1].mxu0  ;;  %v3149_v30 = vpop.f32.mrb[17].mxu1 }
 0x51c   :  { %v533_v31 = vpop.f32.mrb[2].mxu0  ;;  %v584_v32 = vpop.f32.mrb[18].mxu1  ;;  %v639_v33 = vsel %vm317_vm2, %v637_v28, -inf }
 0x51d   :  { %v3144_v34 = vpop.f32.mrb[3].mxu0  ;;  %640 = vmax.xlane.f32.xlu1 %v639_v33  ;;  %v3150_v36 = vpop.f32.mrb[19].mxu1 }
 0x522   :  { %v631_v39 = vpop.f32.mrb[4].mxu0 }
 0x523   :  { %v638_v40 = vsel %vm4101_vm10, %v631_v39, -1e+30  ;;  %v3155_v41 = vpop.f32.mrb[5].mxu0 }
 0x524   :  { %v634_v42 = vpop.f32.mrb[6].mxu0  ;;  %v642_v43 = vsel %vm317_vm2, %v638_v40, -inf }
 0x525   :  { %643 = vmax.xlane.f32.xlu0 %v642_v43  ;;  %v3156_v44 = vpop.f32.mrb[7].mxu0 }
 0x53b   :  { %711 = vrot.lane.b32.xlu0 %v4068_v14, %s3795_s30 }
 0x53f   :  { %854 = vrot.lane.b32.xlu0 %v4064_v11, %s3796_s5 }
 0x5aa   :  { %v641_v46 = vpop.xlane.xlu1 %640 }
 0x5ab   :  { %v645_v47 = vsub.f32 %v637_v28, %v641_v46 }
 0x5ad   :  { %v647_v48 = vmul.f32 1.442695, %v645_v47 }
 0x5af   :  { %3457 = vpow2.f32 %v647_v48 }
 0x5b2   :  { %v644_v49 = vpop.xlane.xlu0 %643 }
 0x5b3   :  { %v646_v50 = vsub.f32 %v638_v40, %v644_v49 }
 0x5b5   :  { %v649_v51 = vmul.f32 1.442695, %v646_v50 }
 0x5b6   :  { %v712_v52 = vpop.permute.xlu0 %711 }
 0x5b7   :  { %3459 = vpow2.f32 %v649_v51  ;;  %v717_v53 = vsel %vm444_vm11, %v712_v52, 0 }
 0x5b8   :  { %3164 = vmatpush3.bf16.msra.mxu0 %v717_v53 }
 0x5b9   :  { %v3458_v54 = vpop.eup %3457  ;;  %3175 = vmatprep.subr.bf16.mxu0 %v3787_v0 }
 0x5ba   :  { %v651_v55 = vsel %vm317_vm2, %v3458_v54, 0.0  ;;  %v855_v29 = vpop.permute.xlu0 %854 }
 0x5bb   :  { %652 = vadd.xlane.f32.xlu1 %v651_v55 }
 0x5c1   :  { %v3460_v56 = vpop.eup %3459 }
 0x5c2   :  { %v654_v57 = vsel %vm317_vm2, %v3460_v56, 0.0 }
 0x5c3   :  { %655 = vadd.xlane.f32.xlu1 %v654_v57 }
 0x5d4   :  { %663 = vrot.lane.b32.xlu1 %v4064_v11, %s3795_s30 }
 0x5d8   :  { %856 = vrot.lane.b32.xlu1 %v4064_v11, %s3797_s8 }
 0x5dc   :  { %906 = vrot.lane.b32.xlu1 %v4068_v14, %s3797_s8 }
 0x5e0   :  { %904 = vrot.lane.b32.xlu1 %v4068_v14, %s3796_s5 }
 0x648   :  { %v653_v58 = vpop.xlane.xlu1 %652 }
 0x649   :  { %3461 = vrcp.f32 %v653_v58 }
 0x650   :  { %v656_v59 = vpop.xlane.xlu1 %655 }
 0x651   :  { %3463 = vrcp.f32 %v656_v59 }
 0x653   :  { %v3462_v60 = vpop.eup %3461 }
 0x654   :  { %v659_v61 = vmul.f32 %v3462_v60, %v3458_v54  ;;  %v664_v62 = vpop.permute.xlu1 %663 }
 0x655   :  { %v669_v63 = vsel %vm444_vm11, %v664_v62, 0 }
 0x656   :  { %3158 = vmatpush3.bf16.msra.mxu1 %v669_v63  ;;  %v661_v1 = vpack.c.bf16 %v659_v61, %v659_v61 }
 0x657   :  { %3169 = vmatprep.subr.bf16.mxu1 %v3787_v0 }
 0x658   :  { %v857_v9 = vpop.permute.xlu1 %856 }
 0x659   :  { %3160 = vmatmul.mubr.msk.bf16.vlgmr.msra.gmra.mrb[20].mxu1 %vm317_vm2, %v661_v1  ;;  %v862_v25 = vsel %vm317_vm2, %v857_v9, 0 }
 0x65a   :  { %3171 = vmatprep.mubr.msk.bf16.mxu1 %vm3788_vm0, %v3787_v0  ;;  %3170 = vmatpush3.bf16.msra.mxu1 %v764_v16 }
 0x65b   :  { %v3464_v2 = vpop.eup %3463  ;;  %3181 = vmatprep.subr.bf16.mxu1 %v3787_v0 }
 0x65c   :  { %v660_v6 = vmul.f32 %v3464_v2, %v3460_v56  ;;  %v907_v10 = vpop.permute.xlu1 %906 }
 0x65d   :  { %v912_v12 = vsel %vm317_vm2, %v907_v10, 0 }
 0x65e   :  { %v662_v7 = vpack.c.bf16 %v660_v6, %v660_v6 }
 0x660   :  { %3166 = vmatmul.mubr.msk.bf16.vlgmr.msra.gmra.mrb[8].mxu0 %vm317_vm2, %v662_v7  ;;  %v905_v13 = vpop.permute.xlu1 %904 }
 0x661   :  { %3176 = vmatpush3.bf16.msra.mxu0 %v811_v8  ;;  %3177 = vmatprep.mubr.msk.bf16.mxu0 %vm3788_vm0, %v3787_v0 }
 0x662   :  { %3187 = vmatprep.subr.bf16.mxu0 %v3787_v0 }
 0x668   :  { %3178 = vmatmul.mubr.msk.bf16.vlgmr.msra.gmra.mrb[12].mxu0 %vm317_vm2, %v536_v27 }
 0x669   :  { %3189 = vmatprep.mubr.msk.bf16.mxu0 %vm3788_vm0, %v3787_v0 }
 0x66a   :  { %3188 = vmatpush3.bf16.xpose.msra.mxu0 %v912_v12 }
 0x66b   :  { %3199 = vmatprep.subr.bf16.mxu0 %v3787_v0 }
 0x671   :  { %3190 = vmatmul.mubr.msk.bf16.vlgmr.msra.gmra.mrb[16].mxu0 %vm317_vm2, %v905_v13 }
 0x672   :  { %3201 = vmatprep.mubr.msk.bf16.mxu0 %vm3788_vm0, %v3787_v0 }
 0x72c   :  { %v705_v17 = vpop.f32.mrb[20].mxu1 }
 0x72d   :  { %v3161_v18 = vpop.f32.mrb[21].mxu1 }
 0x72e   :  { %v708_v19 = vpop.f32.mrb[22].mxu1 }
 0x72f   :  { %v3162_v20 = vpop.f32.mrb[23].mxu1 }
 0x730   :  { %v309_v20 = vld [vmem:[%s4643_s22 + $0x8] sm:$0xf] }
 0x733   :  { %v753_v21 = vpop.f32.mrb[8].mxu0 }
 0x734   :  { %v759_v22 = vpack.c.bf16 %v753_v21, %v705_v17  ;;  %v3167_v23 = vpop.f32.mrb[9].mxu0  ;;  %v1081_v21 = vsel %vm444_vm11, %v309_v20, 0 }
 0x735   :  { %v756_v24 = vpop.f32.mrb[10].mxu0 }
 0x736   :  { %v3168_v26 = vpop.f32.mrb[11].mxu0  ;;  %3172 = vmatmul.mubr.msk.bf16.vlgmr.msra.gmra.mrb[24].mxu1 %vm317_vm2, %v759_v22 }
 0x737   :  { %3182 = vmatpush3.bf16.xpose.msra.mxu1 %v862_v25  ;;  %3183 = vmatprep.mubr.msk.bf16.mxu1 %vm3788_vm0, %v3787_v0 }
 0x738   :  { %3193 = vmatprep.subr.bf16.mxu1 %v3787_v0 }
 0x73b   :  { %v847_v27 = vpop.f32.mrb[12].mxu0 }
 0x73c   :  { %v3179_v28 = vpop.f32.mrb[13].mxu0 }
 0x73d   :  { %v850_v30 = vpop.f32.mrb[14].mxu0 }
 0x73e   :  { %v3180_v31 = vpop.f32.mrb[15].mxu0  ;;  %3184 = vmatmul.mubr.msk.bf16.vlgmr.msra.gmra.mrb[28].mxu1 %vm317_vm2, %v855_v29 }
 0x73f   :  { %3195 = vmatprep.mubr.msk.bf16.mxu1 %vm3788_vm0, %v3787_v0 }
 0x744   :  { %v948_v32 = vpop.f32.mrb[16].mxu0 }
 0x745   :  { %v955_v33 = vsel %vm4101_vm10, %v948_v32, -1e+30  ;;  %v3191_v34 = vpop.f32.mrb[17].mxu0 }
 0x746   :  { %v951_v36 = vpop.f32.mrb[18].mxu0  ;;  %v959_v39 = vsel %vm317_vm2, %v955_v33, -inf }
 0x747   :  { %960 = vmax.xlane.f32.xlu1 %v959_v39  ;;  %v3192_v40 = vpop.f32.mrb[19].mxu0 }
 0x758   :  { %980 = vrot.lane.b32.xlu1 %v4064_v11, %s3798_s24 }
 0x75c   :  { %1128 = vrot.lane.b32.xlu1 %v4064_v11, %s3799_s16 }
 0x760   :  { %1178 = vrot.lane.b32.xlu1 %v4068_v14, %s3799_s16 }
 0x764   :  { %1176 = vrot.lane.b32.xlu1 %v4068_v14, %s3800_s27 }
 0x7d4   :  { %v961_v41 = vpop.xlane.xlu1 %960 }
 0x7d5   :  { %v963_v44 = vsub.f32 %v955_v33, %v961_v41 }
 0x7d7   :  { %v966_v46 = vmul.f32 1.442695, %v963_v44 }
 0x7d8   :  { %v981_v42 = vpop.permute.xlu1 %980 }
 0x7d9   :  { %v986_v43 = vsel %vm444_vm11, %v981_v42, 0  ;;  %3465 = vpow2.f32 %v966_v46 }
 0x7da   :  { %3194 = vmatpush3.bf16.msra.mxu1 %v986_v43 }
 0x7db   :  { %3205 = vmatprep.subr.bf16.mxu1 %v3787_v0 }
 0x7dc   :  { %v1129_v15 = vpop.permute.xlu1 %1128 }
 0x7dd   :  { %v1134_v17 = vsel %vm317_vm2, %v1129_v15, 0 }
 0x7e0   :  { %v1179_v26 = vpop.permute.xlu1 %1178 }
 0x7e1   :  { %v1184_v31 = vsel %vm317_vm2, %v1179_v26, 0  ;;  %v2965_v26 = vld [vmem:[#allocation7] ss:$0 sm:$0xff] }
 0x7e3   :  { %v3466_v58 = vpop.eup %3465 }
 0x7e4   :  { %v971_v60 = vsel %vm317_vm2, %v3466_v58, 0.0  ;;  %v1177_v42 = vpop.permute.xlu1 %1176 }
 0x809   :  { %v800_v47 = vpop.f32.mrb[24].mxu1 }
 0x80a   :  { %v4216_v48 = vadd.f32 %v847_v27, %v800_v47  ;;  %v3173_v49 = vpop.f32.mrb[25].mxu1 }
 0x80b   :  { %v803_v50 = vpop.f32.mrb[26].mxu1 }
 0x80c   :  { %v4218_v51 = vadd.f32 %v850_v30, %v803_v50  ;;  %v3174_v52 = vpop.f32.mrb[27].mxu1 }
 0x811   :  { %v898_v53 = vpop.f32.mrb[28].mxu1 }
 0x812   :  { %v954_v54 = vsel %vm4089_vm8, %v898_v53, -1e+30  ;;  %v3185_v55 = vpop.f32.mrb[29].mxu1 }
 0x813   :  { %v901_v56 = vpop.f32.mrb[30].mxu1  ;;  %v956_v57 = vsel %vm317_vm2, %v954_v54, -inf }
 0x814   :  { %957 = vmax.xlane.f32.xlu0 %v956_v57  ;;  %v3186_v59 = vpop.f32.mrb[31].mxu1 }
 0x818   :  { %972 = vadd.xlane.f32.xlu0 %v971_v60 }
 0x8a1   :  { %v958_v61 = vpop.xlane.xlu0 %957 }
 0x8a2   :  { %v962_v62 = vsub.f32 %v954_v54, %v958_v61 }
 0x8a4   :  { %v964_v63 = vmul.f32 1.442695, %v962_v62 }
 0x8a5   :  { %v973_v5 = vpop.xlane.xlu0 %972 }
 0x8a6   :  { %3467 = vpow2.f32 %v964_v63 }
 0x8a7   :  { %3469 = vrcp.f32 %v973_v5 }
 0x8b0   :  { %v3468_v1 = vpop.eup %3467 }
 0x8b1   :  { %v968_v2 = vsel %vm317_vm2, %v3468_v1, 0.0  ;;  %v3470_v6 = vpop.eup %3469 }
 0x8b2   :  { %969 = vadd.xlane.f32.xlu0 %v968_v2  ;;  %v977_v8 = vmul.f32 %v3470_v6, %v3466_v58 }
 0x8b4   :  { %v979_v12 = vpack.c.bf16 %v977_v8, %v977_v8  ;;  %v310_v8 = vld [vmem:[%s4643_s22 + $0xc] sm:$0xf] }
 0x8c8   :  { %1028 = vrot.lane.b32.xlu0 %v4068_v14, %s3798_s24 }
 0x8cc   :  { %1126 = vrot.lane.b32.xlu0 %v4064_v11, %s3800_s27 }
 0x93f   :  { %v970_v7 = vpop.xlane.xlu0 %969 }
 0x940   :  { %3471 = vrcp.f32 %v970_v7 }
 0x943   :  { %v1029_v9 = vpop.permute.xlu0 %1028 }
 0x944   :  { %v1034_v10 = vsel %vm444_vm11, %v1029_v9, 0  ;;  %v1353_v9 = vsel %vm444_vm11, %v310_v8, 0 }
 0x945   :  { %3200 = vmatpush3.bf16.msra.mxu0 %v1034_v10 }
 0x946   :  { %3211 = vmatprep.subr.bf16.mxu0 %v3787_v0 }
 0x947   :  { %v1127_v19 = vpop.permute.xlu0 %1126 }
 0x948   :  { %3202 = vmatmul.mubr.msk.bf16.vlgmr.msra.gmra.mrb[20].mxu0 %vm317_vm2, %v979_v12 }
 0x949   :  { %3213 = vmatprep.mubr.msk.bf16.mxu0 %vm3788_vm0, %v3787_v0 }
 0x94a   :  { %v3472_v13 = vpop.eup %3471 }
 0x94b   :  { %v976_v16 = vmul.f32 %v3472_v13, %v3468_v1 }
 0x94d   :  { %v978_v18 = vpack.c.bf16 %v976_v16, %v976_v16 }
 0x94e   :  { %3212 = vmatpush3.bf16.xpose.msra.mxu0 %v1134_v17 }
 0x94f   :  { %3196 = vmatmul.mubr.msk.bf16.vlgmr.msra.gmra.mrb[32].mxu1 %vm317_vm2, %v978_v18  ;;  %3223 = vmatprep.subr.bf16.mxu0 %v3787_v0 }
 0x950   :  { %3207 = vmatprep.mubr.msk.bf16.mxu1 %vm3788_vm0, %v3787_v0  ;;  %3206 = vmatpush3.bf16.msra.mxu1 %v1081_v21 }
 0x951   :  { %3217 = vmatprep.subr.bf16.mxu1 %v3787_v0 }
 0x955   :  { %3214 = vmatmul.mubr.msk.bf16.vlgmr.msra.gmra.mrb[24].mxu0 %vm317_vm2, %v1127_v19 }
 0x956   :  { %3225 = vmatprep.mubr.msk.bf16.mxu0 %vm3788_vm0, %v3787_v0 }
 0xa1b   :  { %v1070_v22 = vpop.f32.mrb[20].mxu0 }
 0xa1c   :  { %v3203_v23 = vpop.f32.mrb[21].mxu0 }
 0xa1d   :  { %v1073_v24 = vpop.f32.mrb[22].mxu0 }
 0xa1e   :  { %v3204_v25 = vpop.f32.mrb[23].mxu0 }
 0xa22   :  { %v1022_v27 = vpop.f32.mrb[32].mxu1 }
 0xa23   :  { %v1076_v28 = vpack.c.bf16 %v1070_v22, %v1022_v27  ;;  %v3197_v29 = vpop.f32.mrb[33].mxu1 }
 0xa24   :  { %v1025_v30 = vpop.f32.mrb[34].mxu1 }
 0xa25   :  { %v3198_v32 = vpop.f32.mrb[35].mxu1  ;;  %3208 = vmatmul.mubr.msk.bf16.vlgmr.msra.gmra.mrb[36].mxu1 %vm317_vm2, %v1076_v28 }
 0xa26   :  { %3218 = vmatpush3.bf16.xpose.msra.mxu1 %v1184_v31  ;;  %3219 = vmatprep.mubr.msk.bf16.mxu1 %vm3788_vm0, %v3787_v0 }
 0xa27   :  { %3229 = vmatprep.subr.bf16.mxu1 %v3787_v0 }
 0xa28   :  { %v1170_v33 = vpop.f32.mrb[24].mxu0 }
 0xa29   :  { %v1226_v34 = vsel %vm4089_vm8, %v1170_v33, -1e+30  ;;  %v3215_v36 = vpop.f32.mrb[25].mxu0 }
 0xa2a   :  { %v1173_v39 = vpop.f32.mrb[26].mxu0  ;;  %v1228_v40 = vsel %vm317_vm2, %v1226_v34, -inf }
 0xa2b   :  { %1229 = vmax.xlane.f32.xlu0 %v1228_v40  ;;  %v3216_v41 = vpop.f32.mrb[27].mxu0 }
 0xa2d   :  { %3220 = vmatmul.mubr.msk.bf16.vlgmr.msra.gmra.mrb[40].mxu1 %vm317_vm2, %v1177_v42 }
 0xa2e   :  { %3231 = vmatprep.mubr.msk.bf16.mxu1 %vm3788_vm0, %v3787_v0 }
 0xab8   :  { %v1230_v43 = vpop.xlane.xlu0 %1229 }
 0xab9   :  { %v1234_v44 = vsub.f32 %v1226_v34, %v1230_v43 }
 0xabb   :  { %v1236_v46 = vmul.f32 1.442695, %v1234_v44 }
 0xabd   :  { %3473 = vpow2.f32 %v1236_v46 }
 0xac7   :  { %v3474_v47 = vpop.eup %3473 }
 0xac8   :  { %v1240_v37 = vsel %vm317_vm2, %v3474_v47, 0.0 }
 0xac9   :  { %1241 = vadd.xlane.f32.xlu0 %v1240_v37 }
 0xaf8   :  { %v1117_v49 = vpop.f32.mrb[36].mxu1 }
 0xaf9   :  { %v1124_v50 = vadd.f32 %v1117_v49, %v4216_v48  ;;  %v3209_v52 = vpop.f32.mrb[37].mxu1 }
 0xafa   :  { %v1120_v53 = vpop.f32.mrb[38].mxu1 }
 0xafb   :  { %v1125_v54 = vadd.f32 %v1120_v53, %v4218_v51  ;;  %v3210_v55 = vpop.f32.mrb[39].mxu1  ;;  %v3436_v53 = vld [vmem:[%s4612_s11 + $0x8] sm:$0xff]  }
 0xafc   :  { %v189_v55 = vld [vmem:[%s4644_s10 + $0x8] sm:$0xff] }
 0xb00   :  { %v1220_v56 = vpop.f32.mrb[40].mxu1 }
 0xb01   :  { %v1227_v57 = vsel %vm4101_vm10, %v1220_v56, -1e+30  ;;  %v3221_v58 = vpop.f32.mrb[41].mxu1 }
 0xb02   :  { %v1223_v59 = vpop.f32.mrb[42].mxu1  ;;  %v1231_v60 = vsel %vm317_vm2, %v1227_v57, -inf  ;;  %v3438_v58 = vld [vmem:[%s4610_s9 + $0x8] sm:$0xff]  }
 0xb03   :  { %1232 = vmax.xlane.f32.xlu1 %v1231_v60  ;;  %v3222_v61 = vpop.f32.mrb[43].mxu1 }
 0xb14   :  { %1252 = vrot.lane.b32.xlu1 %v4064_v11, %s3801_s29 }
 0xb56   :  { %v1242_v62 = vpop.xlane.xlu0 %1241 }
 0xb57   :  { %3475 = vrcp.f32 %v1242_v62 }
 0xb61   :  { %v3476_v48 = vpop.eup %3475 }
 0xb62   :  { %v1248_v51 = vmul.f32 %v3476_v48, %v3474_v47 }
 0xb64   :  { %v1250_v6 = vpack.c.bf16 %v1248_v51, %v1248_v51  ;;  %v2966_v51 = vld [vmem:[#allocation8] ss:$0 sm:$0xff] }
 0xb90   :  { %v1233_v63 = vpop.xlane.xlu1 %1232 }
 0xb91   :  { %v1235_v1 = vsub.f32 %v1227_v57, %v1233_v63  ;;  %v3437_v57 = vld [vmem:[%s4610_s9] sm:$0xff]  }
 0xb93   :  { %v1238_v2 = vmul.f32 1.442695, %v1235_v1 }
 0xb94   :  { %v1253_v5 = vpop.permute.xlu1 %1252 }
 0xb95   :  { %3477 = vpow2.f32 %v1238_v2  ;;  %v1258_v45 = vsel %vm444_vm11, %v1253_v5, 0 }
 0xb96   :  { %3224 = vmatpush3.bf16.msra.mxu0 %v1258_v45 }
 0xb97   :  { %3235 = vmatprep.subr.bf16.mxu0 %v3787_v0 }
 0xb99   :  { %3226 = vmatmul.mubr.msk.bf16.vlgmr.msra.gmra.mrb[28].mxu0 %vm317_vm2, %v1250_v6 }
 0xb9a   :  { %3237 = vmatprep.mubr.msk.bf16.mxu0 %vm3788_vm0, %v3787_v0  ;;  %3236 = vmatpush3.bf16.msra.mxu0 %v1353_v9 }
 0xb9b   :  { %3249 = vmatprep.subr.bf16.mxu0 %v3787_v0 }
 0xb9f   :  { %v3478_v11 = vpop.eup %3477 }
 0xba0   :  { %v1243_v7 = vsel %vm317_vm2, %v3478_v11, 0.0 }
 0xba1   :  { %1244 = vadd.xlane.f32.xlu0 %v1243_v7 }
 0xbb7   :  { %1300 = vrot.lane.b32.xlu0 %v4068_v14, %s3801_s29 }
 0xc2e   :  { %v1245_v10 = vpop.xlane.xlu0 %1244 }
 0xc2f   :  { %3479 = vrcp.f32 %v1245_v10 }
 0xc32   :  { %v1301_v12 = vpop.permute.xlu0 %1300 }
 0xc33   :  { %v1306_v13 = vsel %vm444_vm11, %v1301_v12, 0  ;;  %v2972_v12 = vld [vmem:[#allocation13] ss:$0 sm:$0xff] }
 0xc34   :  { %3230 = vmatpush3.bf16.msra.mxu1 %v1306_v13 }
 0xc35   :  { %3241 = vmatprep.subr.bf16.mxu1 %v3787_v0 }
 0xc39   :  { %v3480_v15 = vpop.eup %3479 }
 0xc3a   :  { %v1249_v16 = vmul.f32 %v3480_v15, %v3478_v11  ;;  %v2967_v11 = vld [vmem:[#allocation10] ss:$0 sm:$0xff] }
 0xc3c   :  { %v1251_v14 = vpack.c.bf16 %v1249_v16, %v1249_v16 }
 0xc3e   :  { %3232 = vmatmul.mubr.msk.bf16.vlgmr.msra.gmra.mrb[44].mxu1 %vm317_vm2, %v1251_v14 }
 0xc3f   :  { %3245 = vmatprep.mubr.msk.bf16.mxu1 %vm3788_vm0, %v3787_v0  ;;  %3242 = vmatpush3.bf16.msra.mxu1 %v3437_v57 }
 0xc40   :  { %3243 = vmatprep.subr.bf16.mxu1 %v3787_v0 }
 0xc43   :  { %3244 = vmatpush3.bf16.msra.mxu1 %v3438_v58 }
 0xc44   :  { %3257 = vmatprep.subr.bf16.mxu1 %v3787_v0 }
 0xc6c   :  { %v1294_v17 = vpop.f32.mrb[28].mxu0 }
 0xc6d   :  { %v3227_v18 = vpop.f32.mrb[29].mxu0 }
 0xc6e   :  { %v1297_v19 = vpop.f32.mrb[30].mxu0 }
 0xc6f   :  { %v3228_v20 = vpop.f32.mrb[31].mxu0 }
 0xd11   :  { %v1342_v21 = vpop.f32.mrb[44].mxu1 }
 0xd12   :  { %v1348_v22 = vpack.c.bf16 %v1342_v21, %v1294_v17  ;;  %v3233_v23 = vpop.f32.mrb[45].mxu1 }
 0xd13   :  { %v1345_v24 = vpop.f32.mrb[46].mxu1  ;;  %v2968_v23 = vld [vmem:[#allocation11] ss:$0 sm:$0xff] }
 0xd14   :  { %v3234_v25 = vpop.f32.mrb[47].mxu1  ;;  %3238 = vmatmul.mubr.msk.bf16.vlgmr.msra.gmra.mrb[32].mxu0 %vm317_vm2, %v1348_v22 }
 0xd15   :  { %3253 = vmatprep.mubr.msk.bf16.mxu0 %vm3788_vm0, %v3787_v0 }
 0xde7   :  { %v1389_v27 = vpop.f32.mrb[32].mxu0 }
 0xde8   :  { %v1396_v28 = vadd.f32 %v1389_v27, %v1124_v50  ;;  %v3239_v29 = vpop.f32.mrb[33].mxu0 }
 0xde9   :  { %v1392_v30 = vpop.f32.mrb[34].mxu0 }
 0xdea   :  { %v1404_v31 = vadd.f32 %v2965_v26, %v1396_v28  ;;  %v1397_v32 = vadd.f32 %v1392_v30, %v1125_v54  ;;  %v3240_v33 = vpop.f32.mrb[35].mxu0  ;;  %v188_v54 = vld [vmem:[%s4644_s10] sm:$0xff] }
 0xdeb   :  { %v1521_v56 = vpack.c.bf16 %v189_v55, %v188_v54 }
 0xdec   :  { %v1405_v34 = vadd.f32 %v2965_v26, %v1397_v32  ;;  %v1406_v36 = vadd.f32 %v1404_v31, %v4050_v3 }
 0xdee   :  { %v1410_v39 = vsel %vm262_vm1, %v1406_v36, 0.0  ;;  %v1407_v40 = vadd.f32 %v1405_v34, %v4055_v4  ;;  %v3435_v4 = vld [vmem:[%s4612_s11] sm:$0xff]  }
 0xdef   :  { %1411 = vadd.xlane.f32.xlu1 %v1410_v39  ;;  %3250 = vmatpush3.bf16.msra.mxu0 %v3435_v4 }
 0xdf0   :  { %v1413_v41 = vsel %vm262_vm1, %v1407_v40, 0.0  ;;  %3251 = vmatprep.subr.bf16.mxu0 %v3787_v0 }
 0xdf1   :  { %1414 = vadd.xlane.f32.xlu0 %v1413_v41 }
 0xdf3   :  { %3252 = vmatpush3.bf16.msra.mxu0 %v3436_v53 }
 0xdf4   :  { %3263 = vmatprep.subr.bf16.mxu0 %v3787_v0 }
 0xdf6   :  { %3254 = vmatmul.mubr.msk.bf16.vlgmr.msra.gmra.mrb[36].mxu0 %vm262_vm1, %v1521_v56 }
 0xdf7   :  { %3265 = vmatprep.mubr.msk.bf16.mxu0 %vm3788_vm0, %v3787_v0 }
 0xe7c   :  { %v1412_v42 = vpop.xlane.xlu1 %1411 }
 0xe7d   :  { %v1417_v43 = vmul.f32 0.03125, %v1412_v42 }
 0xe7e   :  { %v1415_v44 = vpop.xlane.xlu0 %1414 }
 0xe7f   :  { %v1419_v46 = vsub.f32 %v1406_v36, %v1417_v43  ;;  %v1418_v47 = vmul.f32 0.03125, %v1415_v44 }
 0xe81   :  { %v1420_v37 = vsub.f32 %v1407_v40, %v1418_v47  ;;  %v1421_v49 = vmul.f32 %v1419_v46, %v1419_v46 }
 0xe83   :  { %v1423_v50 = vsel %vm262_vm1, %v1421_v49, 0.0  ;;  %v1422_v52 = vmul.f32 %v1420_v37, %v1420_v37 }
 0xe84   :  { %1424 = vadd.xlane.f32.xlu1 %v1423_v50 }
 0xe85   :  { %v1426_v3 = vsel %vm262_vm1, %v1422_v52, 0.0 }
 0xe86   :  { %1427 = vadd.xlane.f32.xlu0 %v1426_v3 }
 0xec9   :  { %v1582_v13 = vpop.f32.mrb[36].mxu0 }
 0xeca   :  { %v1583_v15 = vadd.f32 %v2972_v12, %v1582_v13  ;;  %v3255_v16 = vpop.f32.mrb[37].mxu0 }
 0xecb   :  { %v1585_v14 = vpop.f32.mrb[38].mxu0 }
 0xecc   :  { %v4325_v17 = vpack.c.bf16 %v1583_v15, %v1583_v15  ;;  %v1586_v18 = vadd.f32 %v2972_v12, %v1585_v14  ;;  %v3256_v19 = vpop.f32.mrb[39].mxu0 }
 0xece   :  { %v4327_v20 = vpack.c.bf16 %v1586_v18, %v1586_v18  ;;  %v1602_v21 = vsel %vm317_vm2, %v4325_v17, 0 }
 0xed0   :  { %v1648_v22 = vsel %vm317_vm2, %v4327_v20, 0 }
 0xed1   :  { %3264 = vmatpush3.bf16.xpose.msra.mxu0 %v1648_v22 }
 0xed2   :  { %3275 = vmatprep.subr.bf16.mxu0 %v3787_v0 }
 0xf11   :  { %v1425_v59 = vpop.xlane.xlu1 %1424 }
 0xf12   :  { %v1429_v60 = vmul.f32 0.03125, %v1425_v59 }
 0xf13   :  { %v1428_v61 = vpop.xlane.xlu0 %1427 }
 0xf14   :  { %v1431_v62 = vadd.f32 1e-05, %v1429_v60  ;;  %v1430_v48 = vmul.f32 0.03125, %v1428_v61 }
 0xf16   :  { %3481 = vrsqrt.f32 %v1431_v62  ;;  %v1432_v63 = vadd.f32 1e-05, %v1430_v48 }
 0xf18   :  { %3483 = vrsqrt.f32 %v1432_v63 }
 0xf20   :  { %v3482_v1 = vpop.eup %3481 }
 0xf21   :  { %v1435_v2 = vmul.f32 %v3482_v1, %v1419_v46 }
 0xf22   :  { %v3484_v5 = vpop.eup %3483 }
 0xf23   :  { %v1443_v45 = vmul.f32 %v2966_v51, %v1435_v2  ;;  %v1436_v6 = vmul.f32 %v3484_v5, %v1420_v37 }
 0xf25   :  { %v1444_v7 = vmul.f32 %v2966_v51, %v1436_v6  ;;  %v4316_v8 = vadd.f32 %v2967_v11, %v1443_v45 }
 0xf27   :  { %v4318_v9 = vadd.f32 %v2967_v11, %v1444_v7 }
 0xf29   :  { %v1453_v10 = vpack.c.bf16 %v4318_v9, %v4316_v8 }
 0xf2b   :  { %3246 = vmatmul.mubr.msk.bf16.vlgmr.msra.gmra.mrb[48].mxu1 %vm262_vm1, %v1453_v10 }
 0xf2c   :  { %3259 = vmatprep.mubr.msk.bf16.mxu1 %vm3788_vm0, %v3787_v0  ;;  %3258 = vmatpush3.bf16.xpose.msra.mxu1 %v1602_v21 }
 0xf2d   :  { %3269 = vmatprep.subr.bf16.mxu1 %v3787_v0 }
 0xffe   :  { %v1514_v24 = vpop.f32.mrb[48].mxu1 }
 0xfff   :  { %v1515_v25 = vadd.f32 %v2968_v23, %v1514_v24  ;;  %v3247_v26 = vpop.f32.mrb[49].mxu1 }
0x1000   :  { %v1517_v27 = vpop.f32.mrb[50].mxu1 }
0x1001   :  { %v4335_v28 = vpack.c.bf16 %v1515_v25, %v1515_v25  ;;  %v1518_v29 = vadd.f32 %v2968_v23, %v1517_v27  ;;  %v3248_v30 = vpop.f32.mrb[51].mxu1 }
0x1003   :  { %v4337_v31 = vpack.c.bf16 %v1518_v29, %v1518_v29  ;;  %3260 = vmatmul.mubr.msk.bf16.vlgmr.msra.gmra.mrb[52].mxu1 %vm317_vm2, %v4335_v28 }
0x1004   :  { %3271 = vmatprep.mubr.msk.bf16.mxu1 %vm3788_vm0, %v3787_v0 }
0x1005   :  { %3266 = vmatmul.mubr.msk.bf16.vlgmr.msra.gmra.mrb[40].mxu0 %vm317_vm2, %v4337_v31 }
0x1006   :  { %3277 = vmatprep.mubr.msk.bf16.mxu0 %vm3788_vm0, %v3787_v0 }
0x10d6   :  { %v1638_v32 = vpop.f32.mrb[52].mxu1 }
0x10d7   :  { %v1690_v33 = vsel %vm234_vm7, %v1638_v32, -1e+30  ;;  %v3261_v34 = vpop.f32.mrb[53].mxu1 }
0x10d8   :  { %v1641_v36 = vpop.f32.mrb[54].mxu1  ;;  %v1684_v39 = vpop.f32.mrb[40].mxu0  ;;  %v1692_v40 = vsel %vm317_vm2, %v1690_v33, -inf }
0x10d9   :  { %v1691_v41 = vsel %vm235_vm9, %v1684_v39, -1e+30  ;;  %v3267_v42 = vpop.f32.mrb[41].mxu0  ;;  %1693 = vmax.xlane.f32.xlu1 %v1692_v40  ;;  %v3262_v43 = vpop.f32.mrb[55].mxu1 }
0x10da   :  { %v1687_v44 = vpop.f32.mrb[42].mxu0  ;;  %v1695_v46 = vsel %vm317_vm2, %v1691_v41, -inf }
0x10db   :  { %1696 = vmax.xlane.f32.xlu0 %v1695_v46  ;;  %v3268_v47 = vpop.f32.mrb[43].mxu0 }
0x10ea   :  { %1717 = vrot.lane.b32.xlu1 %v4325_v17, %s3789_s1 }
0x1166   :  { %v1694_v37 = vpop.xlane.xlu1 %1693 }
0x1167   :  { %v1698_v49 = vsub.f32 %v1690_v33, %v1694_v37 }
0x1168   :  { %v1697_v50 = vpop.xlane.xlu0 %1696 }
0x1169   :  { %v1700_v52 = vmul.f32 1.442695, %v1698_v49  ;;  %v1699_v3 = vsub.f32 %v1691_v41, %v1697_v50 }
0x116a   :  { %v1718_v4 = vpop.permute.xlu1 %1717 }
0x116b   :  { %3485 = vpow2.f32 %v1700_v52  ;;  %v1702_v53 = vmul.f32 1.442695, %v1699_v3  ;;  %v1723_v54 = vsel %vm444_vm11, %v1718_v4, 0 }
0x116c   :  { %3270 = vmatpush3.bf16.msra.mxu1 %v1723_v54 }
0x116d   :  { %3487 = vpow2.f32 %v1702_v53  ;;  %3281 = vmatprep.subr.bf16.mxu1 %v3787_v0 }
0x1175   :  { %v3486_v55 = vpop.eup %3485 }
0x1176   :  { %v1704_v56 = vsel %vm317_vm2, %v3486_v55, 0.0 }
0x1177   :  { %v3488_v57 = vpop.eup %3487  ;;  %1705 = vadd.xlane.f32.xlu1 %v1704_v56 }
0x1178   :  { %v1707_v58 = vsel %vm317_vm2, %v3488_v57, 0.0 }
0x1179   :  { %1708 = vadd.xlane.f32.xlu0 %v1707_v58  ;;  %v1590_v58 = vld [vmem:[%s4614_s13 + $0x4] sm:$0xf] }
0x1188   :  { %1818 = vrot.lane.b32.xlu1 %v4325_v17, %s3794_s26 }
0x118c   :  { %1869 = vrot.lane.b32.xlu1 %v4327_v20, %s3794_s26 }
0x118f   :  { %1766 = vrot.lane.b32.xlu0 %v4327_v20, %s3789_s1 }
0x1190   :  { %1867 = vrot.lane.b32.xlu1 %v4337_v31, %s3794_s26 }
0x1193   :  { %1816 = vrot.lane.b32.xlu0 %v4335_v28, %s3794_s26 }
0x1204   :  { %v1706_v59 = vpop.xlane.xlu1 %1705 }
0x1205   :  { %3489 = vrcp.f32 %v1706_v59 }
0x1206   :  { %v1709_v60 = vpop.xlane.xlu0 %1708 }
0x1207   :  { %3491 = vrcp.f32 %v1709_v60 }
0x1208   :  { %v1819_v48 = vpop.permute.xlu1 %1818 }
0x1209   :  { %v1824_v6 = vsel %vm317_vm2, %v1819_v48, 0  ;;  %v1589_v48 = vld [vmem:[%s4614_s13] sm:$0xf] }
0x120a   :  { %v1767_v61 = vpop.permute.xlu0 %1766 }
0x120b   :  { %v1772_v62 = vsel %vm444_vm11, %v1767_v61, 0  ;;  %v2044_v61 = vsel %vm444_vm11, %v1590_v58, 0 }
0x120c   :  { %3276 = vmatpush3.bf16.msra.mxu0 %v1772_v62  ;;  %v1870_v45 = vpop.permute.xlu1 %1869 }
0x120d   :  { %3287 = vmatprep.subr.bf16.mxu0 %v3787_v0  ;;  %v1875_v7 = vsel %vm317_vm2, %v1870_v45, 0 }
0x120e   :  { %v1817_v10 = vpop.permute.xlu0 %1816 }
0x120f   :  { %v3490_v63 = vpop.eup %3489 }
0x1210   :  { %v1712_v1 = vmul.f32 %v3490_v63, %v3486_v55  ;;  %v1868_v12 = vpop.permute.xlu1 %1867 }
0x1211   :  { %v3492_v51 = vpop.eup %3491 }
0x1212   :  { %v1713_v2 = vmul.f32 %v3492_v51, %v3488_v57  ;;  %v1714_v5 = vpack.c.bf16 %v1712_v1, %v1712_v1  ;;  %v2091_v51 = vsel %vm444_vm11, %v1589_v48, 0 }
0x1214   :  { %3272 = vmatmul.mubr.msk.bf16.vlgmr.msra.gmra.mrb[56].mxu1 %vm317_vm2, %v1714_v5  ;;  %v1715_v11 = vpack.c.bf16 %v1713_v2, %v1713_v2 }
0x1215   :  { %3282 = vmatpush3.bf16.xpose.msra.mxu1 %v1824_v6  ;;  %3283 = vmatprep.mubr.msk.bf16.mxu1 %vm3788_vm0, %v3787_v0 }
0x1216   :  { %3278 = vmatmul.mubr.msk.bf16.vlgmr.msra.gmra.mrb[44].mxu0 %vm317_vm2, %v1715_v11  ;;  %3293 = vmatprep.subr.bf16.mxu1 %v3787_v0 }
0x1217   :  { %3288 = vmatpush3.bf16.xpose.msra.mxu0 %v1875_v7  ;;  %3289 = vmatprep.mubr.msk.bf16.mxu0 %vm3788_vm0, %v3787_v0 }
0x1218   :  { %3299 = vmatprep.subr.bf16.mxu0 %v3787_v0 }
0x121c   :  { %3284 = vmatmul.mubr.msk.bf16.vlgmr.msra.gmra.mrb[60].mxu1 %vm317_vm2, %v1817_v10 }
0x121d   :  { %3295 = vmatprep.mubr.msk.bf16.mxu1 %vm3788_vm0, %v3787_v0 }
0x121e   :  { %3290 = vmatmul.mubr.msk.bf16.vlgmr.msra.gmra.mrb[48].mxu0 %vm317_vm2, %v1868_v12 }
0x121f   :  { %3301 = vmatprep.mubr.msk.bf16.mxu0 %vm3788_vm0, %v3787_v0 }
0x12e7   :  { %v4387_v13 = vpop.f32.mrb[56].mxu1 }
0x12e8   :  { %v3273_v15 = vpop.f32.mrb[57].mxu1 }
0x12e9   :  { %v1762_v16 = vpop.f32.mrb[58].mxu1  ;;  %v4389_v14 = vpop.f32.mrb[44].mxu0 }
0x12ea   :  { %v1814_v18 = vpack.c.bf16 %v4389_v14, %v4387_v13  ;;  %v3274_v19 = vpop.f32.mrb[59].mxu1  ;;  %v3279_v21 = vpop.f32.mrb[45].mxu0 }
0x12eb   :  { %v1811_v22 = vpop.f32.mrb[46].mxu0 }
0x12ec   :  { %v3280_v23 = vpop.f32.mrb[47].mxu0 }
0x12ef   :  { %v1860_v24 = vpop.f32.mrb[60].mxu1 }
0x12f0   :  { %v1917_v25 = vsel %vm234_vm7, %v1860_v24, -1e+30  ;;  %v3285_v26 = vpop.f32.mrb[61].mxu1 }
0x12f1   :  { %v1863_v27 = vpop.f32.mrb[62].mxu1  ;;  %v1911_v29 = vpop.f32.mrb[48].mxu0  ;;  %v1919_v30 = vsel %vm317_vm2, %v1917_v25, -inf }
0x12f2   :  { %v1918_v32 = vsel %vm235_vm9, %v1911_v29, -1e+30  ;;  %v3291_v33 = vpop.f32.mrb[49].mxu0  ;;  %1920 = vmax.xlane.f32.xlu0 %v1919_v30  ;;  %v3286_v34 = vpop.f32.mrb[63].mxu1 }
0x12f3   :  { %v1914_v36 = vpop.f32.mrb[50].mxu0  ;;  %v1922_v39 = vsel %vm317_vm2, %v1918_v32, -inf }
0x12f4   :  { %1923 = vmax.xlane.f32.xlu1 %v1922_v39  ;;  %v3292_v40 = vpop.f32.mrb[51].mxu0 }
0x1305   :  { %1943 = vrot.lane.b32.xlu1 %v4325_v17, %s3793_s0 }
0x1309   :  { %2136 = vrot.lane.b32.xlu1 %v4325_v17, %s3796_s5 }
0x130d   :  { %2186 = vrot.lane.b32.xlu1 %v4327_v20, %s3796_s5 }
0x1311   :  { %2184 = vrot.lane.b32.xlu1 %v4337_v31, %s3796_s5 }
0x137f   :  { %v1921_v41 = vpop.xlane.xlu0 %1920 }
0x1380   :  { %v1925_v42 = vsub.f32 %v1917_v25, %v1921_v41 }
0x1381   :  { %v1924_v43 = vpop.xlane.xlu1 %1923 }
0x1382   :  { %v1927_v44 = vmul.f32 1.442695, %v1925_v42  ;;  %v1926_v46 = vsub.f32 %v1918_v32, %v1924_v43 }
0x1384   :  { %3493 = vpow2.f32 %v1927_v44  ;;  %v1929_v47 = vmul.f32 1.442695, %v1926_v46 }
0x1385   :  { %v1944_v37 = vpop.permute.xlu1 %1943 }
0x1386   :  { %3495 = vpow2.f32 %v1929_v47  ;;  %v1949_v49 = vsel %vm444_vm11, %v1944_v37, 0 }
0x1387   :  { %3294 = vmatpush3.bf16.msra.mxu1 %v1949_v49 }
0x1388   :  { %3305 = vmatprep.subr.bf16.mxu1 %v3787_v0 }
0x1389   :  { %v2137_v2 = vpop.permute.xlu1 %2136 }
0x138d   :  { %v2187_v5 = vpop.permute.xlu1 %2186 }
0x138e   :  { %v3494_v50 = vpop.eup %3493  ;;  %v2192_v45 = vsel %vm317_vm2, %v2187_v5, 0 }
0x138f   :  { %v1931_v52 = vsel %vm317_vm2, %v3494_v50, 0.0 }
0x1390   :  { %v3496_v3 = vpop.eup %3495  ;;  %1932 = vadd.xlane.f32.xlu0 %v1931_v52 }
0x1391   :  { %v1934_v4 = vsel %vm317_vm2, %v3496_v3, 0.0  ;;  %v2185_v6 = vpop.permute.xlu1 %2184 }
0x1394   :  { %1935 = vadd.xlane.f32.xlu0 %v1934_v4 }
0x13aa   :  { %1991 = vrot.lane.b32.xlu0 %v4327_v20, %s3793_s0 }
0x13ae   :  { %2134 = vrot.lane.b32.xlu0 %v4335_v28, %s3796_s5 }
0x141d   :  { %v1933_v53 = vpop.xlane.xlu0 %1932 }
0x141e   :  { %3497 = vrcp.f32 %v1933_v53 }
0x1421   :  { %v1936_v54 = vpop.xlane.xlu0 %1935 }
0x1422   :  { %3499 = vrcp.f32 %v1936_v54 }
0x1425   :  { %v1992_v55 = vpop.permute.xlu0 %1991 }
0x1426   :  { %v1997_v56 = vsel %vm444_vm11, %v1992_v55, 0 }
0x1427   :  { %3300 = vmatpush3.bf16.msra.mxu0 %v1997_v56 }
0x1428   :  { %v3498_v57 = vpop.eup %3497  ;;  %3311 = vmatprep.subr.bf16.mxu0 %v3787_v0 }
0x1429   :  { %v1939_v59 = vmul.f32 %v3498_v57, %v3494_v50  ;;  %v2135_v23 = vpop.permute.xlu0 %2134 }
0x142b   :  { %v1941_v60 = vpack.c.bf16 %v1939_v59, %v1939_v59 }
0x142c   :  { %v3500_v62 = vpop.eup %3499 }
0x142d   :  { %v1940_v63 = vmul.f32 %v3500_v62, %v3496_v3  ;;  %3296 = vmatmul.mubr.msk.bf16.vlgmr.msra.gmra.mrb[64].mxu1 %vm317_vm2, %v1941_v60 }
0x142e   :  { %3306 = vmatpush3.bf16.msra.mxu1 %v2044_v61  ;;  %3307 = vmatprep.mubr.msk.bf16.mxu1 %vm3788_vm0, %v3787_v0 }
0x142f   :  { %v1942_v1 = vpack.c.bf16 %v1940_v63, %v1940_v63  ;;  %3317 = vmatprep.subr.bf16.mxu1 %v3787_v0 }
0x1431   :  { %3302 = vmatmul.mubr.msk.bf16.vlgmr.msra.gmra.mrb[52].mxu0 %vm317_vm2, %v1942_v1 }
0x1432   :  { %3312 = vmatpush3.bf16.msra.mxu0 %v2091_v51  ;;  %3313 = vmatprep.mubr.msk.bf16.mxu0 %vm3788_vm0, %v3787_v0 }
0x1433   :  { %3323 = vmatprep.subr.bf16.mxu0 %v3787_v0 }
0x1439   :  { %3314 = vmatmul.mubr.msk.bf16.vlgmr.msra.gmra.mrb[56].mxu0 %vm317_vm2, %v1814_v18  ;;  %v2142_v18 = vsel %vm317_vm2, %v2137_v2, 0 }
0x143a   :  { %3325 = vmatprep.mubr.msk.bf16.mxu0 %vm3788_vm0, %v3787_v0 }
0x143b   :  { %3324 = vmatpush3.bf16.xpose.msra.mxu0 %v2192_v45 }
0x143c   :  { %3335 = vmatprep.subr.bf16.mxu0 %v3787_v0 }
0x1442   :  { %3326 = vmatmul.mubr.msk.bf16.vlgmr.msra.gmra.mrb[60].mxu0 %vm317_vm2, %v2185_v6 }
0x1443   :  { %3337 = vmatprep.mubr.msk.bf16.mxu0 %vm3788_vm0, %v3787_v0 }
0x1500   :  { %v1985_v11 = vpop.f32.mrb[64].mxu1 }
0x1501   :  { %v3297_v7 = vpop.f32.mrb[65].mxu1 }
0x1502   :  { %v1988_v10 = vpop.f32.mrb[66].mxu1  ;;  %v1591_v7 = vld [vmem:[%s4614_s13 + $0x8] sm:$0xf] }
0x1503   :  { %v3298_v12 = vpop.f32.mrb[67].mxu1  ;;  %v2361_v10 = vsel %vm444_vm11, %v1591_v7, 0 }
0x1504   :  { %v2033_v13 = vpop.f32.mrb[52].mxu0 }
0x1505   :  { %v2039_v15 = vpack.c.bf16 %v2033_v13, %v1985_v11  ;;  %v3303_v16 = vpop.f32.mrb[53].mxu0 }
0x1506   :  { %v2036_v14 = vpop.f32.mrb[54].mxu0 }
0x1507   :  { %v3304_v19 = vpop.f32.mrb[55].mxu0  ;;  %3308 = vmatmul.mubr.msk.bf16.vlgmr.msra.gmra.mrb[68].mxu1 %vm317_vm2, %v2039_v15 }
0x1508   :  { %3318 = vmatpush3.bf16.xpose.msra.mxu1 %v2142_v18  ;;  %3319 = vmatprep.mubr.msk.bf16.mxu1 %vm3788_vm0, %v3787_v0 }
0x1509   :  { %3329 = vmatprep.subr.bf16.mxu1 %v3787_v0 }
0x150c   :  { %v2127_v21 = vpop.f32.mrb[56].mxu0 }
0x150d   :  { %v3315_v22 = vpop.f32.mrb[57].mxu0 }
0x150e   :  { %v2130_v24 = vpop.f32.mrb[58].mxu0 }
0x150f   :  { %v3316_v25 = vpop.f32.mrb[59].mxu0  ;;  %3320 = vmatmul.mubr.msk.bf16.vlgmr.msra.gmra.mrb[72].mxu1 %vm317_vm2, %v2135_v23 }
0x1510   :  { %3331 = vmatprep.mubr.msk.bf16.mxu1 %vm3788_vm0, %v3787_v0 }
0x1515   :  { %v2228_v26 = vpop.f32.mrb[60].mxu0 }
0x1516   :  { %v2235_v27 = vsel %vm235_vm9, %v2228_v26, -1e+30  ;;  %v3327_v29 = vpop.f32.mrb[61].mxu0 }
0x1517   :  { %v2231_v30 = vpop.f32.mrb[62].mxu0  ;;  %v2239_v32 = vsel %vm317_vm2, %v2235_v27, -inf }
0x1518   :  { %2240 = vmax.xlane.f32.xlu1 %v2239_v32  ;;  %v3328_v33 = vpop.f32.mrb[63].mxu0 }
0x1529   :  { %2260 = vrot.lane.b32.xlu1 %v4325_v17, %s3797_s8 }
0x152d   :  { %2408 = vrot.lane.b32.xlu1 %v4325_v17, %s3800_s27 }
0x1531   :  { %2458 = vrot.lane.b32.xlu1 %v4327_v20, %s3800_s27 }
0x1535   :  { %2456 = vrot.lane.b32.xlu1 %v4337_v31, %s3800_s27 }
0x15a5   :  { %v2241_v34 = vpop.xlane.xlu1 %2240 }
0x15a6   :  { %v2243_v40 = vsub.f32 %v2235_v27, %v2241_v34 }
0x15a8   :  { %v2246_v41 = vmul.f32 1.442695, %v2243_v40 }
0x15a9   :  { %v2261_v36 = vpop.permute.xlu1 %2260 }
0x15aa   :  { %v2266_v39 = vsel %vm444_vm11, %v2261_v36, 0  ;;  %3501 = vpow2.f32 %v2246_v41 }
0x15ab   :  { %3330 = vmatpush3.bf16.msra.mxu1 %v2266_v39 }
0x15ac   :  { %3341 = vmatprep.subr.bf16.mxu1 %v3787_v0 }
0x15b4   :  { %v3502_v4 = vpop.eup %3501 }
0x15b5   :  { %v2251_v54 = vsel %vm317_vm2, %v3502_v4, 0.0 }
0x15da   :  { %v2080_v42 = vpop.f32.mrb[68].mxu1 }
0x15db   :  { %v4465_v43 = vadd.f32 %v2127_v21, %v2080_v42  ;;  %v3309_v44 = vpop.f32.mrb[69].mxu1 }
0x15dc   :  { %v2083_v46 = vpop.f32.mrb[70].mxu1 }
0x15dd   :  { %v4467_v47 = vadd.f32 %v2130_v24, %v2083_v46  ;;  %v3310_v37 = vpop.f32.mrb[71].mxu1 }
0x15e2   :  { %v2178_v49 = vpop.f32.mrb[72].mxu1 }
0x15e3   :  { %v2234_v31 = vsel %vm234_vm7, %v2178_v49, -1e+30  ;;  %v3321_v50 = vpop.f32.mrb[73].mxu1 }
0x15e4   :  { %v2181_v52 = vpop.f32.mrb[74].mxu1  ;;  %v2236_v3 = vsel %vm317_vm2, %v2234_v31, -inf }
0x15e5   :  { %2237 = vmax.xlane.f32.xlu0 %v2236_v3  ;;  %v3322_v53 = vpop.f32.mrb[75].mxu1 }
0x15e9   :  { %2252 = vadd.xlane.f32.xlu0 %v2251_v54 }
0x1672   :  { %v2238_v55 = vpop.xlane.xlu0 %2237 }
0x1673   :  { %v2242_v56 = vsub.f32 %v2234_v31, %v2238_v55 }
0x1675   :  { %v2244_v57 = vmul.f32 1.442695, %v2242_v56 }
0x1676   :  { %v2253_v60 = vpop.xlane.xlu0 %2252 }
0x1677   :  { %3503 = vpow2.f32 %v2244_v57 }
0x1678   :  { %3505 = vrcp.f32 %v2253_v60 }
0x1681   :  { %v3504_v58 = vpop.eup %3503 }
0x1682   :  { %v2248_v59 = vsel %vm317_vm2, %v3504_v58, 0.0  ;;  %v3506_v61 = vpop.eup %3505 }
0x1683   :  { %2249 = vadd.xlane.f32.xlu0 %v2248_v59  ;;  %v2257_v48 = vmul.f32 %v3506_v61, %v3502_v4  ;;  %v1592_v61 = vld [vmem:[%s4614_s13 + $0xc] sm:$0xf] }
0x1685   :  { %v2259_v51 = vpack.c.bf16 %v2257_v48, %v2257_v48 }
0x1699   :  { %2308 = vrot.lane.b32.xlu0 %v4327_v20, %s3797_s8 }
0x169d   :  { %2406 = vrot.lane.b32.xlu0 %v4335_v28, %s3800_s27  ;;  %v2409_v28 = vpop.permute.xlu1 %2408 }
0x169e   :  { %v2414_v45 = vsel %vm317_vm2, %v2409_v28, 0 }
0x16a1   :  { %v2459_v14 = vpop.permute.xlu1 %2458 }
0x16a2   :  { %v2464_v23 = vsel %vm317_vm2, %v2459_v14, 0 }
0x16a5   :  { %v2457_v33 = vpop.permute.xlu1 %2456 }
0x1710   :  { %v2250_v62 = vpop.xlane.xlu0 %2249 }
0x1711   :  { %3507 = vrcp.f32 %v2250_v62  ;;  %v2633_v62 = vsel %vm444_vm11, %v1592_v61, 0 }
0x1714   :  { %v2309_v63 = vpop.permute.xlu0 %2308 }
0x1715   :  { %v2314_v1 = vsel %vm444_vm11, %v2309_v63, 0 }
0x1716   :  { %3336 = vmatpush3.bf16.msra.mxu0 %v2314_v1 }
0x1717   :  { %3347 = vmatprep.subr.bf16.mxu0 %v3787_v0 }
0x1718   :  { %v2407_v11 = vpop.permute.xlu0 %2406 }
0x1719   :  { %3338 = vmatmul.mubr.msk.bf16.vlgmr.msra.gmra.mrb[64].mxu0 %vm317_vm2, %v2259_v51 }
0x171a   :  { %3349 = vmatprep.mubr.msk.bf16.mxu0 %vm3788_vm0, %v3787_v0 }
0x171b   :  { %v3508_v2 = vpop.eup %3507 }
0x171c   :  { %v2256_v5 = vmul.f32 %v3508_v2, %v3504_v58 }
0x171e   :  { %v2258_v6 = vpack.c.bf16 %v2256_v5, %v2256_v5 }
0x171f   :  { %3348 = vmatpush3.bf16.xpose.msra.mxu0 %v2414_v45 }
0x1720   :  { %3332 = vmatmul.mubr.msk.bf16.vlgmr.msra.gmra.mrb[76].mxu1 %vm317_vm2, %v2258_v6  ;;  %3359 = vmatprep.subr.bf16.mxu0 %v3787_v0 }
0x1721   :  { %3343 = vmatprep.mubr.msk.bf16.mxu1 %vm3788_vm0, %v3787_v0  ;;  %3342 = vmatpush3.bf16.msra.mxu1 %v2361_v10 }
0x1722   :  { %3353 = vmatprep.subr.bf16.mxu1 %v3787_v0 }
0x1726   :  { %3350 = vmatmul.mubr.msk.bf16.vlgmr.msra.gmra.mrb[68].mxu0 %vm317_vm2, %v2407_v11 }
0x1727   :  { %3361 = vmatprep.mubr.msk.bf16.mxu0 %vm3788_vm0, %v3787_v0 }
0x17ec   :  { %v2350_v12 = vpop.f32.mrb[64].mxu0 }
0x17ed   :  { %v3339_v13 = vpop.f32.mrb[65].mxu0 }
0x17ee   :  { %v2353_v15 = vpop.f32.mrb[66].mxu0 }
0x17ef   :  { %v3340_v16 = vpop.f32.mrb[67].mxu0  ;;  %v2996_v15 = vld [vmem:[#allocation14] ss:$0 sm:$0xff] }
0x17f3   :  { %v2302_v18 = vpop.f32.mrb[76].mxu1 }
0x17f4   :  { %v2356_v19 = vpack.c.bf16 %v2350_v12, %v2302_v18  ;;  %v3333_v21 = vpop.f32.mrb[77].mxu1 }
0x17f5   :  { %v2305_v22 = vpop.f32.mrb[78].mxu1 }
0x17f6   :  { %v3334_v24 = vpop.f32.mrb[79].mxu1  ;;  %3344 = vmatmul.mubr.msk.bf16.vlgmr.msra.gmra.mrb[80].mxu1 %vm317_vm2, %v2356_v19 }
0x17f7   :  { %3354 = vmatpush3.bf16.xpose.msra.mxu1 %v2464_v23  ;;  %3355 = vmatprep.mubr.msk.bf16.mxu1 %vm3788_vm0, %v3787_v0 }
0x17f8   :  { %3365 = vmatprep.subr.bf16.mxu1 %v3787_v0 }
0x17f9   :  { %v2450_v25 = vpop.f32.mrb[68].mxu0 }
0x17fa   :  { %v2506_v26 = vsel %vm234_vm7, %v2450_v25, -1e+30  ;;  %v3351_v27 = vpop.f32.mrb[69].mxu0 }
0x17fb   :  { %v2453_v29 = vpop.f32.mrb[70].mxu0  ;;  %v2508_v30 = vsel %vm317_vm2, %v2506_v26, -inf }
0x17fc   :  { %2509 = vmax.xlane.f32.xlu0 %v2508_v30  ;;  %v3352_v32 = vpop.f32.mrb[71].mxu0 }
0x17fe   :  { %3356 = vmatmul.mubr.msk.bf16.vlgmr.msra.gmra.mrb[84].mxu1 %vm317_vm2, %v2457_v33 }
0x17ff   :  { %3367 = vmatprep.mubr.msk.bf16.mxu1 %vm3788_vm0, %v3787_v0 }
0x1889   :  { %v2510_v34 = vpop.xlane.xlu0 %2509 }
0x188a   :  { %v2514_v36 = vsub.f32 %v2506_v26, %v2510_v34 }
0x188c   :  { %v2516_v39 = vmul.f32 1.442695, %v2514_v36 }
0x188e   :  { %3509 = vpow2.f32 %v2516_v39 }
0x1898   :  { %v3510_v40 = vpop.eup %3509 }
0x1899   :  { %v2520_v35 = vsel %vm317_vm2, %v3510_v40, 0.0 }
0x189a   :  { %2521 = vadd.xlane.f32.xlu0 %v2520_v35 }
0x18c9   :  { %v2397_v41 = vpop.f32.mrb[80].mxu1 }
0x18ca   :  { %v2404_v42 = vadd.f32 %v2397_v41, %v4465_v43  ;;  %v3345_v44 = vpop.f32.mrb[81].mxu1 }
0x18cb   :  { %v2400_v46 = vpop.f32.mrb[82].mxu1  ;;  %v3441_v44 = vld [vmem:[%s4620_s19] sm:$0xff]  }
0x18cc   :  { %v2405_v37 = vadd.f32 %v2400_v46, %v4467_v47  ;;  %v3346_v49 = vpop.f32.mrb[83].mxu1  ;;  %v3442_v46 = vld [vmem:[%s4620_s19 + $0x8] sm:$0xff]  }
0x18cd   :  { %v3444_v49 = vld [vmem:[%s4620_s19 + $0x18] sm:$0xff]  }
0x18d1   :  { %v2500_v31 = vpop.f32.mrb[84].mxu1 }
0x18d2   :  { %v2507_v50 = vsel %vm235_vm9, %v2500_v31, -1e+30  ;;  %v3357_v52 = vpop.f32.mrb[85].mxu1  ;;  %v3445_v31 = vld [vmem:[%s4620_s19 + $0x20] sm:$0xff]  }
0x18d3   :  { %v2503_v3 = vpop.f32.mrb[86].mxu1  ;;  %v2511_v4 = vsel %vm317_vm2, %v2507_v50, -inf }
0x18d4   :  { %2512 = vmax.xlane.f32.xlu1 %v2511_v4  ;;  %v3358_v53 = vpop.f32.mrb[87].mxu1 }
0x18e5   :  { %2532 = vrot.lane.b32.xlu1 %v4325_v17, %s3799_s16 }
0x1927   :  { %v2522_v54 = vpop.xlane.xlu0 %2521 }
0x1928   :  { %3511 = vrcp.f32 %v2522_v54 }
0x1932   :  { %v3512_v43 = vpop.eup %3511 }
0x1933   :  { %v2528_v47 = vmul.f32 %v3512_v43, %v3510_v40 }
0x1935   :  { %v2530_v59 = vpack.c.bf16 %v2528_v47, %v2528_v47 }
0x1961   :  { %v2513_v55 = vpop.xlane.xlu1 %2512 }
0x1962   :  { %v2515_v56 = vsub.f32 %v2507_v50, %v2513_v55  ;;  %v3446_v50 = vld [vmem:[%s4620_s19 + $0x28] sm:$0xff]  }
0x1964   :  { %v2518_v57 = vmul.f32 1.442695, %v2515_v56  ;;  %v2997_v56 = vld [vmem:[#allocation16] ss:$0 sm:$0xff] }
0x1965   :  { %v2533_v58 = vpop.permute.xlu1 %2532 }
0x1966   :  { %3513 = vpow2.f32 %v2518_v57  ;;  %v2538_v38 = vsel %vm444_vm11, %v2533_v58, 0 }
0x1967   :  { %3360 = vmatpush3.bf16.msra.mxu0 %v2538_v38 }
0x1968   :  { %3371 = vmatprep.subr.bf16.mxu0 %v3787_v0 }
0x196a   :  { %3362 = vmatmul.mubr.msk.bf16.vlgmr.msra.gmra.mrb[72].mxu0 %vm317_vm2, %v2530_v59  ;;  %v2998_v59 = vld [vmem:[#allocation17] ss:$0 sm:$0xff] }
0x196b   :  { %3373 = vmatprep.mubr.msk.bf16.mxu0 %vm3788_vm0, %v3787_v0  ;;  %3372 = vmatpush3.bf16.msra.mxu0 %v2633_v62 }
0x196c   :  { %3385 = vmatprep.subr.bf16.mxu0 %v3787_v0 }
0x1970   :  { %v3514_v17 = vpop.eup %3513 }
0x1971   :  { %v2523_v60 = vsel %vm317_vm2, %v3514_v17, 0.0 }
0x1972   :  { %2524 = vadd.xlane.f32.xlu0 %v2523_v60 }
0x1988   :  { %2580 = vrot.lane.b32.xlu0 %v4327_v20, %s3799_s16 }
0x19ff   :  { %v2525_v48 = vpop.xlane.xlu0 %2524 }
0x1a00   :  { %3515 = vrcp.f32 %v2525_v48  ;;  %v3447_v48 = vld [vmem:[%s4620_s19 + $0x30] sm:$0xff]  }
0x1a03   :  { %v2581_v63 = vpop.permute.xlu0 %2580 }
0x1a04   :  { %v2586_v1 = vsel %vm444_vm11, %v2581_v63, 0  ;;  %v3448_v63 = vld [vmem:[%s4620_s19 + $0x38] sm:$0xff]  }
0x1a05   :  { %3366 = vmatpush3.bf16.msra.mxu1 %v2586_v1  ;;  %v2999_v1 = vld [vmem:[%s4619_s18] ss:$0 sm:$0xff] }
0x1a06   :  { %3377 = vmatprep.subr.bf16.mxu1 %v3787_v0 }
0x1a0a   :  { %v3516_v51 = vpop.eup %3515 }
0x1a0b   :  { %v2529_v2 = vmul.f32 %v3516_v51, %v3514_v17 }
0x1a0d   :  { %v2531_v20 = vpack.c.bf16 %v2529_v2, %v2529_v2 }
0x1a0f   :  { %3368 = vmatmul.mubr.msk.bf16.vlgmr.msra.gmra.mrb[88].mxu1 %vm317_vm2, %v2531_v20 }
0x1a10   :  { %3381 = vmatprep.mubr.msk.bf16.mxu1 %vm3788_vm0, %v3787_v0 }
0x1a3d   :  { %v2574_v28 = vpop.f32.mrb[72].mxu0 }
0x1a3e   :  { %v3363_v5 = vpop.f32.mrb[73].mxu0 }
0x1a3f   :  { %v2577_v45 = vpop.f32.mrb[74].mxu0 }
0x1a40   :  { %v3364_v6 = vpop.f32.mrb[75].mxu0 }
0x1ae2   :  { %v2622_v11 = vpop.f32.mrb[88].mxu1 }
0x1ae3   :  { %v2628_v7 = vpack.c.bf16 %v2622_v11, %v2574_v28  ;;  %v3369_v10 = vpop.f32.mrb[89].mxu1 }
0x1ae4   :  { %v2625_v12 = vpop.f32.mrb[90].mxu1 }
0x1ae5   :  { %v3370_v13 = vpop.f32.mrb[91].mxu1  ;;  %3374 = vmatmul.mubr.msk.bf16.vlgmr.msra.gmra.mrb[76].mxu0 %vm317_vm2, %v2628_v7 }
0x1ae6   :  { %3401 = vmatprep.mubr.msk.bf16.mxu0 %vm3788_vm0, %v3787_v0  ;;  %3386 = vmatpush3.bf16.msra.mxu0 %v3441_v44 }
0x1ae7   :  { %3387 = vmatprep.subr.bf16.mxu0 %v3787_v0 }
0x1aea   :  { %3388 = vmatpush3.bf16.msra.mxu0 %v3442_v46 }
0x1aeb   :  { %3389 = vmatprep.subr.bf16.mxu0 %v3787_v0 }
0x1bb8   :  { %v2669_v16 = vpop.f32.mrb[76].mxu0 }
0x1bb9   :  { %v2676_v14 = vadd.f32 %v2669_v16, %v2404_v42  ;;  %v3375_v18 = vpop.f32.mrb[77].mxu0  ;;  %v3440_v42 = vld [vmem:[%s4618_s17 + $0x8] sm:$0xff]  }
0x1bba   :  { %v2672_v19 = vpop.f32.mrb[78].mxu0 }
0x1bbb   :  { %v2684_v21 = vadd.f32 %v2996_v15, %v2676_v14  ;;  %v2677_v22 = vadd.f32 %v2672_v19, %v2405_v37  ;;  %v3376_v23 = vpop.f32.mrb[79].mxu0  ;;  %v3443_v37 = vld [vmem:[%s4620_s19 + $0x10] sm:$0xff]   ;;  %s3802_s19 = smov [#allocation19]  }
0x1bbc   :  { %3390 = vmatpush3.bf16.msra.mxu0 %v3443_v37  ;;  %s2924_s18 = sshll.u32 %s3802_s19, 4  ;;  %s2925_s18 = int_to_ptr.vmem [resolvable:$true] %s2924_s18 }
0x1bbd   :  { %v2685_v24 = vadd.f32 %v2996_v15, %v2677_v22  ;;  %v2686_v25 = vadd.f32 %v2684_v21, %v4316_v8  ;;  %3391 = vmatprep.subr.bf16.mxu0 %v3787_v0  ;;  %s3741_s8 = scalar_lea.vmem %s2925_s18, 256  ;;  %p3746_p11 = scmp.lt.s32.totalorder %s2925_s18, %s2925_s18 }
0x1bbe   :  { %p3742_p10 = scmp.ne.s32.totalorder %s2925_s18, %s3741_s8  ;;  %p3747_p12 = scmp.lt.s32.totalorder %s3741_s8, %s3741_s8 }
0x1bbf   :  { %v2690_v26 = vsel %vm262_vm1, %v2686_v25, 0.0  ;;  %v2687_v27 = vadd.f32 %v2685_v24, %v4318_v9  ;;  %v3439_v9 = vld [vmem:[%s4618_s17] sm:$0xff]  }
0x1bc0   :  { %2691 = vadd.xlane.f32.xlu1 %v2690_v26  ;;  %3378 = vmatpush3.bf16.msra.mxu1 %v3439_v9  ;;  %p3748_p13 = por %p3747_p12, %p3746_p11 }
0x1bc1   :  { %v2693_v29 = vsel %vm262_vm1, %v2687_v27, 0.0  ;;  %3379 = vmatprep.subr.bf16.mxu1 %v3787_v0  ;;  %3392 = vmatpush3.bf16.msra.mxu0 %v3444_v49 }
0x1bc2   :  { %2694 = vadd.xlane.f32.xlu0 %v2693_v29  ;;  %3393 = vmatprep.subr.bf16.mxu0 %v3787_v0  ;;  %p3749_p0 = pnand %p3748_p13, %p3742_p10 }
0x1bc4   :  { %3380 = vmatpush3.bf16.msra.mxu1 %v3440_v42 }
0x1bc5   :  { %3394 = vmatpush3.bf16.msra.mxu0 %v3445_v31 }
0x1bc6   :  { %3395 = vmatprep.subr.bf16.mxu0 %v3787_v0 }
0x1bc9   :  { %3396 = vmatpush3.bf16.msra.mxu0 %v3446_v50 }
0x1bca   :  { %3397 = vmatprep.subr.bf16.mxu0 %v3787_v0 }
0x1bcd   :  { %3398 = vmatpush3.bf16.msra.mxu0 %v3447_v48 }
0x1bce   :  { %3399 = vmatprep.subr.bf16.mxu0 %v3787_v0  ;;  %v3003_v0 = vld [vmem:[%s4621_s20] ss:$0 sm:$0xff] }
0x1bd1   :  { %3400 = vmatpush3.bf16.msra.mxu0 %v3448_v63 }
0x1c4d   :  { %v2692_v30 = vpop.xlane.xlu1 %2691 }
0x1c4e   :  { %v2696_v32 = vmul.f32 0.03125, %v2692_v30 }
0x1c4f   :  { %v2695_v33 = vpop.xlane.xlu0 %2694 }
0x1c50   :  { %v2698_v34 = vsub.f32 %v2686_v25, %v2696_v32  ;;  %v2697_v36 = vmul.f32 0.03125, %v2695_v33 }
0x1c52   :  { %v2699_v39 = vsub.f32 %v2687_v27, %v2697_v36  ;;  %v2700_v40 = vmul.f32 %v2698_v34, %v2698_v34 }
0x1c54   :  { %v2702_v35 = vsel %vm262_vm1, %v2700_v40, 0.0  ;;  %v2701_v41 = vmul.f32 %v2699_v39, %v2699_v39 }
0x1c55   :  { %2703 = vadd.xlane.f32.xlu1 %v2702_v35 }
0x1c56   :  { %v2705_v8 = vsel %vm262_vm1, %v2701_v41, 0.0 }
0x1c57   :  { %2706 = vadd.xlane.f32.xlu0 %v2705_v8 }
0x1ce2   :  { %v2704_v52 = vpop.xlane.xlu1 %2703 }
0x1ce3   :  { %v2708_v3 = vmul.f32 0.03125, %v2704_v52 }
0x1ce4   :  { %v2707_v4 = vpop.xlane.xlu0 %2706 }
0x1ce5   :  { %v2710_v53 = vadd.f32 1e-05, %v2708_v3  ;;  %v2709_v54 = vmul.f32 0.03125, %v2707_v4 }
0x1ce7   :  { %3517 = vrsqrt.f32 %v2710_v53  ;;  %v2711_v43 = vadd.f32 1e-05, %v2709_v54 }
0x1ce9   :  { %3519 = vrsqrt.f32 %v2711_v43 }
0x1cf1   :  { %v3518_v55 = vpop.eup %3517 }
0x1cf2   :  { %v2714_v47 = vmul.f32 %v3518_v55, %v2698_v34 }
0x1cf3   :  { %v3520_v57 = vpop.eup %3519 }
0x1cf4   :  { %v2722_v58 = vmul.f32 %v2997_v56, %v2714_v47  ;;  %v2715_v38 = vmul.f32 %v3520_v57, %v2699_v39 }
0x1cf6   :  { %v2723_v17 = vmul.f32 %v2997_v56, %v2715_v38  ;;  %v2730_v60 = vadd.f32 %v2998_v59, %v2722_v58 }
0x1cf8   :  { %v2731_v61 = vadd.f32 %v2998_v59, %v2723_v17 }
0x1cfa   :  { %v2732_v62 = vpack.c.bf16 %v2731_v61, %v2730_v60 }
0x1cfc   :  { %3382 = vmatmul.mubr.msk.bf16.vlgmr.msra.gmra.mrb[92].mxu1 %vm262_vm1, %v2732_v62 }
0x1dcf   :  { %v2793_v51 = vpop.f32.mrb[92].mxu1 }
0x1dd0   :  { %v2794_v2 = vadd.f32 %v2999_v1, %v2793_v51  ;;  %v3383_v20 = vpop.f32.mrb[93].mxu1 }
0x1dd1   :  { %v2796_v28 = vpop.f32.mrb[94].mxu1 }
0x1dd2   :  { %v2797_v5 = vadd.f32 %v2999_v1, %v2796_v28  ;;  %v3384_v45 = vpop.f32.mrb[95].mxu1  ;;  %v2800_v6 = vmax.f32 %v2794_v2, 0.0 }
0x1dd4   :  { %v2801_v11 = vmax.f32 %v2797_v5, 0.0 }
0x1dd6   :  { %v2802_v7 = vpack.c.bf16 %v2801_v11, %v2800_v6 }
0x1dd8   :  { %3402 = vmatmul.mubr.bf16.vlgmr.msra.gmra.mrb[80].mxu0 %v2802_v7 }
0x1eab   :  { %v2908_v10 = vpop.f32.mrb[80].mxu0 }
0x1eac   :  { %v2909_v12 = vadd.f32 %v3003_v0, %v2908_v10  ;;  %v3403_v13 = vpop.f32.mrb[81].mxu0 }
0x1ead   :  { %v2911_v15 = vpop.f32.mrb[82].mxu0 }
0x1eae   :  { %v2915_v16 = vadd.f32 %v2909_v12, %v2730_v60  ;;  %v2912_v14 = vadd.f32 %v3003_v0, %v2911_v15  ;;  %v3404_v18 = vpop.f32.mrb[83].mxu0 }
0x1eb0   :  { %2917 = vst.msk [vmem:[#allocation19] sm:$0xff] %vm262_vm1, %v2915_v16  ;;  %v2916_v19 = vadd.f32 %v2912_v14, %v2731_v61 }
0x1eb2   :  { %2918 = vst.msk [vmem:[#allocation19 + $0x8] sm:$0xff] %vm262_vm1, %v2916_v19 }
0x1eb3   :  { %3752 = shalt.err (!%p3749_p0)
}
0x1eb4   :  { %s3753_s25 = scalar_lea.hbm %s4622_s21, 256 }
0x1eb5   :  { %p3754_p1 = scmp.ne.s32.totalorder %s4622_s21, %s3753_s25  ;;  %p3757_p2 = scmp.lt.u32.totalorder %s3753_s25, %s4622_s21 }
0x1eb7   :  { %p3759_p3 = pnand %p3757_p2, %p3754_p1 }
0x1eb9   :  { %3762 = shalt.err (!%p3759_p3)
}
0x1eba   :  { %s3803_s3 = smov 128   ;;  %s3804_s7 = smov 8  }
0x1ebb   :  { %2930 = dma.vmem_to_hbm [thread:$0]  %s2925_s18, 256, %s4622_s21, [#allocation4], %s3803_s3, %s3803_s3, %s3804_s7  }
0x1ebc   :  { %3775 = dma.done.wait [#allocation4], 256  }
0x1ebd   :  { %3776 = vsyncadd [#allocation4], 4294967040 }
0x1ebe   :  { %2934 = vsyncpa [#allocation3], 1 }
0x1ebf   :  { %2935 = vsyncpa [#allocation6], 1 }
0x1ec0   :  { %2936 = vsyncpa [#allocation9], 1 }
0x1ec1   :  { %2937 = vsyncpa [#allocation12], 1 }
0x1ec2   :  { %2938 = vsyncpa [#allocation15], 1 }
0x1ec3   :  { %2939 = vsyncpa [#allocation18], 1 }
0x1ec4   :  { %2940 = vsyncpa [#allocation4], 1 }

</bundles_post_ra>
